<compile_context>
chip_gen: v7x
topology: tpu7x:2x2x1
jax: 0.10.0
libtpu: 0.0.40
codegen_flags: <defaults>
</compile_context>

<pallas_src>
import math

import jax
import jax.numpy as jnp
from jax.experimental import pallas as pl
from jax.experimental.pallas import tpu as pltpu


def _round_up(a, m):
    return ((a + m - 1) // m) * m


def _pad_gate_cols(a, H, Hp):
    """Pad the trailing (3H) axis gate-block-wise ([r|z|n], each H -> Hp)."""
    if Hp == H:
        return a
    lead = a.shape[:-1]
    a3 = a.reshape(lead + (3, H))
    a3 = jnp.pad(a3, [(0, 0)] * len(lead) + [(0, 0), (0, Hp - H)])
    return a3.reshape(lead + (3 * Hp,))


def _gru_cell(x, h, w_ih, w_hh, b_ih, b_hh):
    """PyTorch GRUCell semantics, gate order (r, z, n) along the 3H axis."""
    H = x.shape[-1]
    gi = jnp.dot(x, w_ih, preferred_element_type=jnp.float32) + b_ih
    gh = jnp.dot(h, w_hh, preferred_element_type=jnp.float32) + b_hh
    r = jax.nn.sigmoid(gi[:, 0:H] + gh[:, 0:H])
    z = jax.nn.sigmoid(gi[:, H:2 * H] + gh[:, H:2 * H])
    n = jnp.tanh(gi[:, 2 * H:3 * H] + r * gh[:, 2 * H:3 * H])
    return (1.0 - z) * n + z * h


def decoder_grus_kernel(x_ref, h1_ref, h2_ref, h3_ref,
                        w_ih_ref, w_hh_ref, b_ih_ref, b_hh_ref,
                        o1_ref, o2_ref, o3_ref):
    x = x_ref[...].astype(jnp.float32)
    h1 = h1_ref[...].astype(jnp.float32)
    h2 = h2_ref[...].astype(jnp.float32)
    h3 = h3_ref[...].astype(jnp.float32)

    o1 = _gru_cell(x,  h1, w_ih_ref[0], w_hh_ref[0], b_ih_ref[0], b_hh_ref[0]) + x
    o2 = _gru_cell(o1, h2, w_ih_ref[1], w_hh_ref[1], b_ih_ref[1], b_hh_ref[1]) + o1
    o3 = _gru_cell(o2, h3, w_ih_ref[2], w_hh_ref[2], b_ih_ref[2], b_hh_ref[2]) + o2

    o1_ref[...] = o1.astype(o1_ref.dtype)
    o2_ref[...] = o2.astype(o2_ref.dtype)
    o3_ref[...] = o3.astype(o3_ref.dtype)


def decoder_grus_forward(x, h1, h2, h3, w_ih, w_hh, b_ih, b_hh, *, tile_b=None):
    """
    x, h1, h2, h3 : (B, H) float32
    w_ih, w_hh    : (3, H, 3H)  stacked per-cell weights (transposed vs torch)
    b_ih, b_hh    : (3, 3H)     stacked per-cell biases
    Returns (h1', h2', h3'), each (B, H).
    """
    B, H = x.shape
    Hp = _round_up(H, 128)                    # lane-dense feature dim

    if tile_b is None:
        # per-step activations: (4 inputs + 3 outputs) * tile_b * Hp * 4B, double-buffered.
        budget = 8 * 1024 * 1024
        rows = max(8, (budget // (Hp * 4 * 14)) // 8 * 8)
        tile_b = min(_round_up(B, 8), min(rows, 1024))
    tile_b = max(8, _round_up(tile_b, 8))     # sublane-aligned row tiles
    B_pad = _round_up(B, tile_b)
    grid = (B_pad // tile_b,)

    def pad2d(a):
        return jnp.pad(a, ((0, B_pad - B), (0, Hp - H))) if (B_pad != B or Hp != H) else a

    xp, h1p, h2p, h3p = (pad2d(a) for a in (x, h1, h2, h3))

    # Weights: pad contraction rows (H -> Hp) then each gate column block (H -> Hp).
    if Hp != H:
        w_ih = jnp.pad(w_ih, ((0, 0), (0, Hp - H), (0, 0)))
        w_hh = jnp.pad(w_hh, ((0, 0), (0, Hp - H), (0, 0)))
    w_ihp = _pad_gate_cols(w_ih, H, Hp)
    w_hhp = _pad_gate_cols(w_hh, H, Hp)
    b_ih3 = _pad_gate_cols(b_ih, H, Hp).reshape(3, 1, 3 * Hp)
    b_hh3 = _pad_gate_cols(b_hh, H, Hp).reshape(3, 1, 3 * Hp)

    row_spec = pl.BlockSpec((tile_b, Hp), lambda i: (i, 0))
    w_spec = pl.BlockSpec((3, Hp, 3 * Hp), lambda i: (0, 0, 0))
    b_spec = pl.BlockSpec((3, 1, 3 * Hp), lambda i: (0, 0, 0))
    out_sds = jax.ShapeDtypeStruct((B_pad, Hp), x.dtype)

    o1, o2, o3 = pl.pallas_call(
        decoder_grus_kernel,
        out_shape=(out_sds, out_sds, out_sds),
        grid_spec=pltpu.PrefetchScalarGridSpec(
            num_scalar_prefetch=0,
            grid=grid,
            in_specs=[row_spec, row_spec, row_spec, row_spec,
                      w_spec, w_spec, b_spec, b_spec],
            out_specs=[row_spec, row_spec, row_spec],
        ),
        compiler_params=pltpu.CompilerParams(
            dimension_semantics=("parallel",),          # shard row tiles across TCs
            vmem_limit_bytes=32 * 1024 * 1024,          # stay inside v7x scoped budget
        ),
    )(xp, h1p, h2p, h3p, w_ihp, w_hhp, b_ih3, b_hh3)

    if B_pad != B or Hp != H:
        o1, o2, o3 = o1[:B, :H], o2[:B, :H], o3[:B, :H]
    return o1, o2, o3


def decoder_grus_ref(x, h1, h2, h3, w_ih, w_hh, b_ih, b_hh):
    """Pure-JAX reference (same math, no Pallas) for correctness checking."""
    def cell(xx, hh, wi, wh, bi, bh):
        H = xx.shape[-1]
        gi = xx @ wi + bi
        gh = hh @ wh + bh
        r = jax.nn.sigmoid(gi[:, :H] + gh[:, :H])
        z = jax.nn.sigmoid(gi[:, H:2 * H] + gh[:, H:2 * H])
        n = jnp.tanh(gi[:, 2 * H:] + r * gh[:, 2 * H:])
        return (1.0 - z) * n + z * hh

    o1 = cell(x,  h1, w_ih[0], w_hh[0], b_ih[0], b_hh[0]) + x
    o2 = cell(o1, h2, w_ih[1], w_hh[1], b_ih[1], b_hh[1]) + o1
    o3 = cell(o2, h3, w_ih[2], w_hh[2], b_ih[2], b_hh[2]) + o2
    return o1, o2, o3


def _make_inputs(key, B, H):
    keys = jax.random.split(key, 8)
    x = jax.random.normal(keys[0], (B, H), dtype=jnp.float32)
    h1 = jax.random.normal(keys[1], (B, H), dtype=jnp.float32)
    h2 = jax.random.normal(keys[2], (B, H), dtype=jnp.float32)
    h3 = jax.random.normal(keys[3], (B, H), dtype=jnp.float32)
    bound = 1.0 / math.sqrt(H)                 # nn.GRUCell-style init
    w_ih = jax.random.uniform(keys[4], (3, H, 3 * H), jnp.float32, -bound, bound)
    w_hh = jax.random.uniform(keys[5], (3, H, 3 * H), jnp.float32, -bound, bound)
    b_ih = jax.random.uniform(keys[6], (3, 3 * H), jnp.float32, -bound, bound)
    b_hh = jax.random.uniform(keys[7], (3, 3 * H), jnp.float32, -bound, bound)
    return x, h1, h2, h3, w_ih, w_hh, b_ih, b_hh


if __name__ == "__main__":
    key = jax.random.PRNGKey(0)
    k1, k2 = jax.random.split(key)

    # Case 1: lane-dense hidden_size=128, batch=16, tile_b=8 -> grid=(2,)
    # exercises the row-tiling / pipelining path.
    args = _make_inputs(k1, 16, 128)
    outs = decoder_grus_forward(*args, tile_b=8)
    jax.block_until_ready(outs)
    refs = decoder_grus_ref(*args)
    for o, r in zip(outs, refs):
        assert o.shape == r.shape
        assert bool(jnp.allclose(o, r, atol=2e-4, rtol=2e-4))

    # Case 2: hidden_size=96 (not a lane multiple) exercises the gate-block-aware
    # lane padding path; result must still match the unpadded reference exactly
    # on the valid region.
    args2 = _make_inputs(k2, 8, 96)
    outs2 = decoder_grus_forward(*args2)
    jax.block_until_ready(outs2)
    refs2 = decoder_grus_ref(*args2)
    for o, r in zip(outs2, refs2):
        assert o.shape == r.shape
        assert bool(jnp.allclose(o, r, atol=2e-4, rtol=2e-4))

    print("KERNEL_OK")
</pallas_src>

<mosaic_0001>
module attributes {stable_mosaic.version = 11 : i64} {
  func.func @decoder_grus_kernel(%arg0: i32, %arg1: memref<8x128xf32, #tpu.memory_space<vmem>>, %arg2: memref<8x128xf32, #tpu.memory_space<vmem>>, %arg3: memref<8x128xf32, #tpu.memory_space<vmem>>, %arg4: memref<8x128xf32, #tpu.memory_space<vmem>>, %arg5: memref<3x128x384xf32, #tpu.memory_space<vmem>>, %arg6: memref<3x128x384xf32, #tpu.memory_space<vmem>>, %arg7: memref<3x1x384xf32, #tpu.memory_space<vmem>>, %arg8: memref<3x1x384xf32, #tpu.memory_space<vmem>>, %arg9: memref<8x128xf32, #tpu.memory_space<vmem>>, %arg10: memref<8x128xf32, #tpu.memory_space<vmem>>, %arg11: memref<8x128xf32, #tpu.memory_space<vmem>>) attributes {dimension_semantics = [#tpu.dimension_semantics<parallel>], iteration_bounds = array<i64: 2>, scalar_prefetch = 0 : i64, scratch_operands = 0 : i64, tpu.core_type = #tpu.core_type<tc>, window_params = [{transform_indices = @transform_0, window_bounds = array<i64: 8, 128>}, {transform_indices = @transform_1, window_bounds = array<i64: 8, 128>}, {transform_indices = @transform_2, window_bounds = array<i64: 8, 128>}, {transform_indices = @transform_3, window_bounds = array<i64: 8, 128>}, {pipeline_mode = #tpu.pipeline_mode<synchronous>, transform_indices = @transform_4, window_bounds = array<i64: 3, 128, 384>}, {pipeline_mode = #tpu.pipeline_mode<synchronous>, transform_indices = @transform_5, window_bounds = array<i64: 3, 128, 384>}, {pipeline_mode = #tpu.pipeline_mode<synchronous>, transform_indices = @transform_6, window_bounds = array<i64: 3, 1, 384>}, {pipeline_mode = #tpu.pipeline_mode<synchronous>, transform_indices = @transform_7, window_bounds = array<i64: 3, 1, 384>}, {transform_indices = @transform_8, window_bounds = array<i64: 8, 128>}, {transform_indices = @transform_9, window_bounds = array<i64: 8, 128>}, {transform_indices = @transform_10, window_bounds = array<i64: 8, 128>}]} {
    %c0 = arith.constant 0 : index
    %c0_0 = arith.constant 0 : index
    %0 = vector.load %arg1[%c0, %c0_0] : memref<8x128xf32, #tpu.memory_space<vmem>>, vector<8x128xf32>
    %c0_1 = arith.constant 0 : index
    %c0_2 = arith.constant 0 : index
    %1 = vector.load %arg2[%c0_1, %c0_2] : memref<8x128xf32, #tpu.memory_space<vmem>>, vector<8x128xf32>
    %c0_3 = arith.constant 0 : index
    %c0_4 = arith.constant 0 : index
    %2 = vector.load %arg3[%c0_3, %c0_4] : memref<8x128xf32, #tpu.memory_space<vmem>>, vector<8x128xf32>
    %c0_5 = arith.constant 0 : index
    %c0_6 = arith.constant 0 : index
    %3 = vector.load %arg4[%c0_5, %c0_6] : memref<8x128xf32, #tpu.memory_space<vmem>>, vector<8x128xf32>
    %c0_7 = arith.constant 0 : index
    %c0_8 = arith.constant 0 : index
    %c0_9 = arith.constant 0 : index
    %4 = vector.load %arg5[%c0_7, %c0_8, %c0_9] : memref<3x128x384xf32, #tpu.memory_space<vmem>>, vector<1x128x384xf32>
    %5 = vector.shape_cast %4 : vector<1x128x384xf32> to vector<128x384xf32>
    %c0_10 = arith.constant 0 : index
    %c0_11 = arith.constant 0 : index
    %c0_12 = arith.constant 0 : index
    %6 = vector.load %arg6[%c0_10, %c0_11, %c0_12] : memref<3x128x384xf32, #tpu.memory_space<vmem>>, vector<1x128x384xf32>
    %7 = vector.shape_cast %6 : vector<1x128x384xf32> to vector<128x384xf32>
    %c0_13 = arith.constant 0 : index
    %c0_14 = arith.constant 0 : index
    %c0_15 = arith.constant 0 : index
    %8 = vector.load %arg7[%c0_13, %c0_14, %c0_15] : memref<3x1x384xf32, #tpu.memory_space<vmem>>, vector<1x1x384xf32>
    %9 = vector.shape_cast %8 : vector<1x1x384xf32> to vector<1x384xf32>
    %c0_16 = arith.constant 0 : index
    %c0_17 = arith.constant 0 : index
    %c0_18 = arith.constant 0 : index
    %10 = vector.load %arg8[%c0_16, %c0_17, %c0_18] : memref<3x1x384xf32, #tpu.memory_space<vmem>>, vector<1x1x384xf32>
    %11 = vector.shape_cast %10 : vector<1x1x384xf32> to vector<1x384xf32>
    %cst = arith.constant dense<0.000000e+00> : vector<8x384xf32>
    %12 = tpu.matmul %0, %5, %cst {dimension_numbers = #tpu.dot_dimension_numbers<[1], [0], [0], [1], [0, 0, 1, 1], [], []>} : vector<8x128xf32>, vector<128x384xf32>, vector<8x384xf32> -> vector<8x384xf32>
    %13 = vector.broadcast %9 : vector<1x384xf32> to vector<8x384xf32>
    %14 = arith.addf %12, %13 : vector<8x384xf32>
    %cst_19 = arith.constant dense<0.000000e+00> : vector<8x384xf32>
    %15 = tpu.matmul %1, %7, %cst_19 {dimension_numbers = #tpu.dot_dimension_numbers<[1], [0], [0], [1], [0, 0, 1, 1], [], []>} : vector<8x128xf32>, vector<128x384xf32>, vector<8x384xf32> -> vector<8x384xf32>
    %16 = vector.broadcast %11 : vector<1x384xf32> to vector<8x384xf32>
    %17 = arith.addf %15, %16 : vector<8x384xf32>
    %18 = vector.extract_strided_slice %14 {offsets = [0, 0], sizes = [8, 128], strides = [1, 1]} : vector<8x384xf32> to vector<8x128xf32>
    %19 = vector.extract_strided_slice %17 {offsets = [0, 0], sizes = [8, 128], strides = [1, 1]} : vector<8x384xf32> to vector<8x128xf32>
    %20 = arith.addf %18, %19 : vector<8x128xf32>
    %21 = arith.negf %20 : vector<8x128xf32>
    %22 = math.exp %21 : vector<8x128xf32>
    %cst_20 = arith.constant 1.000000e+00 : f32
    %23 = vector.broadcast %cst_20 : f32 to vector<8x128xf32>
    %24 = arith.addf %23, %22 : vector<8x128xf32>
    %25 = arith.divf %23, %24 : vector<8x128xf32>
    %26 = vector.extract_strided_slice %14 {offsets = [0, 128], sizes = [8, 128], strides = [1, 1]} : vector<8x384xf32> to vector<8x128xf32>
    %27 = vector.extract_strided_slice %17 {offsets = [0, 128], sizes = [8, 128], strides = [1, 1]} : vector<8x384xf32> to vector<8x128xf32>
    %28 = arith.addf %26, %27 : vector<8x128xf32>
    %29 = arith.negf %28 : vector<8x128xf32>
    %30 = math.exp %29 : vector<8x128xf32>
    %cst_21 = arith.constant 1.000000e+00 : f32
    %31 = vector.broadcast %cst_21 : f32 to vector<8x128xf32>
    %32 = arith.addf %31, %30 : vector<8x128xf32>
    %33 = arith.divf %31, %32 : vector<8x128xf32>
    %34 = vector.extract_strided_slice %14 {offsets = [0, 256], sizes = [8, 128], strides = [1, 1]} : vector<8x384xf32> to vector<8x128xf32>
    %35 = vector.extract_strided_slice %17 {offsets = [0, 256], sizes = [8, 128], strides = [1, 1]} : vector<8x384xf32> to vector<8x128xf32>
    %36 = arith.mulf %25, %35 : vector<8x128xf32>
    %37 = arith.addf %34, %36 : vector<8x128xf32>
    %38 = math.tanh %37 : vector<8x128xf32>
    %cst_22 = arith.constant 1.000000e+00 : f32
    %39 = vector.broadcast %cst_22 : f32 to vector<8x128xf32>
    %40 = arith.subf %39, %33 : vector<8x128xf32>
    %41 = arith.mulf %40, %38 : vector<8x128xf32>
    %42 = arith.mulf %33, %1 : vector<8x128xf32>
    %43 = arith.addf %41, %42 : vector<8x128xf32>
    %44 = arith.addf %43, %0 : vector<8x128xf32>
    %c1 = arith.constant 1 : index
    %c0_23 = arith.constant 0 : index
    %c0_24 = arith.constant 0 : index
    %45 = vector.load %arg5[%c1, %c0_23, %c0_24] : memref<3x128x384xf32, #tpu.memory_space<vmem>>, vector<1x128x384xf32>
    %46 = vector.shape_cast %45 : vector<1x128x384xf32> to vector<128x384xf32>
    %c1_25 = arith.constant 1 : index
    %c0_26 = arith.constant 0 : index
    %c0_27 = arith.constant 0 : index
    %47 = vector.load %arg6[%c1_25, %c0_26, %c0_27] : memref<3x128x384xf32, #tpu.memory_space<vmem>>, vector<1x128x384xf32>
    %48 = vector.shape_cast %47 : vector<1x128x384xf32> to vector<128x384xf32>
    %c1_28 = arith.constant 1 : index
    %c0_29 = arith.constant 0 : index
    %c0_30 = arith.constant 0 : index
    %49 = vector.load %arg7[%c1_28, %c0_29, %c0_30] : memref<3x1x384xf32, #tpu.memory_space<vmem>>, vector<1x1x384xf32>
    %50 = vector.shape_cast %49 : vector<1x1x384xf32> to vector<1x384xf32>
    %c1_31 = arith.constant 1 : index
    %c0_32 = arith.constant 0 : index
    %c0_33 = arith.constant 0 : index
    %51 = vector.load %arg8[%c1_31, %c0_32, %c0_33] : memref<3x1x384xf32, #tpu.memory_space<vmem>>, vector<1x1x384xf32>
    %52 = vector.shape_cast %51 : vector<1x1x384xf32> to vector<1x384xf32>
    %cst_34 = arith.constant dense<0.000000e+00> : vector<8x384xf32>
    %53 = tpu.matmul %44, %46, %cst_34 {dimension_numbers = #tpu.dot_dimension_numbers<[1], [0], [0], [1], [0, 0, 1, 1], [], []>} : vector<8x128xf32>, vector<128x384xf32>, vector<8x384xf32> -> vector<8x384xf32>
    %54 = vector.broadcast %50 : vector<1x384xf32> to vector<8x384xf32>
    %55 = arith.addf %53, %54 : vector<8x384xf32>
    %cst_35 = arith.constant dense<0.000000e+00> : vector<8x384xf32>
    %56 = tpu.matmul %2, %48, %cst_35 {dimension_numbers = #tpu.dot_dimension_numbers<[1], [0], [0], [1], [0, 0, 1, 1], [], []>} : vector<8x128xf32>, vector<128x384xf32>, vector<8x384xf32> -> vector<8x384xf32>
    %57 = vector.broadcast %52 : vector<1x384xf32> to vector<8x384xf32>
    %58 = arith.addf %56, %57 : vector<8x384xf32>
    %59 = vector.extract_strided_slice %55 {offsets = [0, 0], sizes = [8, 128], strides = [1, 1]} : vector<8x384xf32> to vector<8x128xf32>
    %60 = vector.extract_strided_slice %58 {offsets = [0, 0], sizes = [8, 128], strides = [1, 1]} : vector<8x384xf32> to vector<8x128xf32>
    %61 = arith.addf %59, %60 : vector<8x128xf32>
    %62 = arith.negf %61 : vector<8x128xf32>
    %63 = math.exp %62 : vector<8x128xf32>
    %cst_36 = arith.constant 1.000000e+00 : f32
    %64 = vector.broadcast %cst_36 : f32 to vector<8x128xf32>
    %65 = arith.addf %64, %63 : vector<8x128xf32>
    %66 = arith.divf %64, %65 : vector<8x128xf32>
    %67 = vector.extract_strided_slice %55 {offsets = [0, 128], sizes = [8, 128], strides = [1, 1]} : vector<8x384xf32> to vector<8x128xf32>
    %68 = vector.extract_strided_slice %58 {offsets = [0, 128], sizes = [8, 128], strides = [1, 1]} : vector<8x384xf32> to vector<8x128xf32>
    %69 = arith.addf %67, %68 : vector<8x128xf32>
    %70 = arith.negf %69 : vector<8x128xf32>
    %71 = math.exp %70 : vector<8x128xf32>
    %cst_37 = arith.constant 1.000000e+00 : f32
    %72 = vector.broadcast %cst_37 : f32 to vector<8x128xf32>
    %73 = arith.addf %72, %71 : vector<8x128xf32>
    %74 = arith.divf %72, %73 : vector<8x128xf32>
    %75 = vector.extract_strided_slice %55 {offsets = [0, 256], sizes = [8, 128], strides = [1, 1]} : vector<8x384xf32> to vector<8x128xf32>
    %76 = vector.extract_strided_slice %58 {offsets = [0, 256], sizes = [8, 128], strides = [1, 1]} : vector<8x384xf32> to vector<8x128xf32>
    %77 = arith.mulf %66, %76 : vector<8x128xf32>
    %78 = arith.addf %75, %77 : vector<8x128xf32>
    %79 = math.tanh %78 : vector<8x128xf32>
    %cst_38 = arith.constant 1.000000e+00 : f32
    %80 = vector.broadcast %cst_38 : f32 to vector<8x128xf32>
    %81 = arith.subf %80, %74 : vector<8x128xf32>
    %82 = arith.mulf %81, %79 : vector<8x128xf32>
    %83 = arith.mulf %74, %2 : vector<8x128xf32>
    %84 = arith.addf %82, %83 : vector<8x128xf32>
    %85 = arith.addf %84, %44 : vector<8x128xf32>
    %c2 = arith.constant 2 : index
    %c0_39 = arith.constant 0 : index
    %c0_40 = arith.constant 0 : index
    %86 = vector.load %arg5[%c2, %c0_39, %c0_40] : memref<3x128x384xf32, #tpu.memory_space<vmem>>, vector<1x128x384xf32>
    %87 = vector.shape_cast %86 : vector<1x128x384xf32> to vector<128x384xf32>
    %c2_41 = arith.constant 2 : index
    %c0_42 = arith.constant 0 : index
    %c0_43 = arith.constant 0 : index
    %88 = vector.load %arg6[%c2_41, %c0_42, %c0_43] : memref<3x128x384xf32, #tpu.memory_space<vmem>>, vector<1x128x384xf32>
    %89 = vector.shape_cast %88 : vector<1x128x384xf32> to vector<128x384xf32>
    %c2_44 = arith.constant 2 : index
    %c0_45 = arith.constant 0 : index
    %c0_46 = arith.constant 0 : index
    %90 = vector.load %arg7[%c2_44, %c0_45, %c0_46] : memref<3x1x384xf32, #tpu.memory_space<vmem>>, vector<1x1x384xf32>
    %91 = vector.shape_cast %90 : vector<1x1x384xf32> to vector<1x384xf32>
    %c2_47 = arith.constant 2 : index
    %c0_48 = arith.constant 0 : index
    %c0_49 = arith.constant 0 : index
    %92 = vector.load %arg8[%c2_47, %c0_48, %c0_49] : memref<3x1x384xf32, #tpu.memory_space<vmem>>, vector<1x1x384xf32>
    %93 = vector.shape_cast %92 : vector<1x1x384xf32> to vector<1x384xf32>
    %cst_50 = arith.constant dense<0.000000e+00> : vector<8x384xf32>
    %94 = tpu.matmul %85, %87, %cst_50 {dimension_numbers = #tpu.dot_dimension_numbers<[1], [0], [0], [1], [0, 0, 1, 1], [], []>} : vector<8x128xf32>, vector<128x384xf32>, vector<8x384xf32> -> vector<8x384xf32>
    %95 = vector.broadcast %91 : vector<1x384xf32> to vector<8x384xf32>
    %96 = arith.addf %94, %95 : vector<8x384xf32>
    %cst_51 = arith.constant dense<0.000000e+00> : vector<8x384xf32>
    %97 = tpu.matmul %3, %89, %cst_51 {dimension_numbers = #tpu.dot_dimension_numbers<[1], [0], [0], [1], [0, 0, 1, 1], [], []>} : vector<8x128xf32>, vector<128x384xf32>, vector<8x384xf32> -> vector<8x384xf32>
    %98 = vector.broadcast %93 : vector<1x384xf32> to vector<8x384xf32>
    %99 = arith.addf %97, %98 : vector<8x384xf32>
    %100 = vector.extract_strided_slice %96 {offsets = [0, 0], sizes = [8, 128], strides = [1, 1]} : vector<8x384xf32> to vector<8x128xf32>
    %101 = vector.extract_strided_slice %99 {offsets = [0, 0], sizes = [8, 128], strides = [1, 1]} : vector<8x384xf32> to vector<8x128xf32>
    %102 = arith.addf %100, %101 : vector<8x128xf32>
    %103 = arith.negf %102 : vector<8x128xf32>
    %104 = math.exp %103 : vector<8x128xf32>
    %cst_52 = arith.constant 1.000000e+00 : f32
    %105 = vector.broadcast %cst_52 : f32 to vector<8x128xf32>
    %106 = arith.addf %105, %104 : vector<8x128xf32>
    %107 = arith.divf %105, %106 : vector<8x128xf32>
    %108 = vector.extract_strided_slice %96 {offsets = [0, 128], sizes = [8, 128], strides = [1, 1]} : vector<8x384xf32> to vector<8x128xf32>
    %109 = vector.extract_strided_slice %99 {offsets = [0, 128], sizes = [8, 128], strides = [1, 1]} : vector<8x384xf32> to vector<8x128xf32>
    %110 = arith.addf %108, %109 : vector<8x128xf32>
    %111 = arith.negf %110 : vector<8x128xf32>
    %112 = math.exp %111 : vector<8x128xf32>
    %cst_53 = arith.constant 1.000000e+00 : f32
    %113 = vector.broadcast %cst_53 : f32 to vector<8x128xf32>
    %114 = arith.addf %113, %112 : vector<8x128xf32>
    %115 = arith.divf %113, %114 : vector<8x128xf32>
    %116 = vector.extract_strided_slice %96 {offsets = [0, 256], sizes = [8, 128], strides = [1, 1]} : vector<8x384xf32> to vector<8x128xf32>
    %117 = vector.extract_strided_slice %99 {offsets = [0, 256], sizes = [8, 128], strides = [1, 1]} : vector<8x384xf32> to vector<8x128xf32>
    %118 = arith.mulf %107, %117 : vector<8x128xf32>
    %119 = arith.addf %116, %118 : vector<8x128xf32>
    %120 = math.tanh %119 : vector<8x128xf32>
    %cst_54 = arith.constant 1.000000e+00 : f32
    %121 = vector.broadcast %cst_54 : f32 to vector<8x128xf32>
    %122 = arith.subf %121, %115 : vector<8x128xf32>
    %123 = arith.mulf %122, %120 : vector<8x128xf32>
    %124 = arith.mulf %115, %3 : vector<8x128xf32>
    %125 = arith.addf %123, %124 : vector<8x128xf32>
    %126 = arith.addf %125, %85 : vector<8x128xf32>
    %c0_55 = arith.constant 0 : index
    %c0_56 = arith.constant 0 : index
    %127 = vector.load %arg9[%c0_55, %c0_56] : memref<8x128xf32, #tpu.memory_space<vmem>>, vector<8x128xf32>
    tpu.vector_store %arg9[%c0_55, %c0_56], %44 {strides = array<i32>} : memref<8x128xf32, #tpu.memory_space<vmem>>, vector<8x128xf32>,
    %c0_57 = arith.constant 0 : index
    %c0_58 = arith.constant 0 : index
    %128 = vector.load %arg10[%c0_57, %c0_58] : memref<8x128xf32, #tpu.memory_space<vmem>>, vector<8x128xf32>
    tpu.vector_store %arg10[%c0_57, %c0_58], %85 {strides = array<i32>} : memref<8x128xf32, #tpu.memory_space<vmem>>, vector<8x128xf32>,
    %c0_59 = arith.constant 0 : index
    %c0_60 = arith.constant 0 : index
    %129 = vector.load %arg11[%c0_59, %c0_60] : memref<8x128xf32, #tpu.memory_space<vmem>>, vector<8x128xf32>
    tpu.vector_store %arg11[%c0_59, %c0_60], %126 {strides = array<i32>} : memref<8x128xf32, #tpu.memory_space<vmem>>, vector<8x128xf32>,
    return
  }
  func.func @transform_0(%arg0: i32) -> (i32, i32) {
    %c0_i32 = arith.constant 0 : i32
    %c0_i32_0 = arith.constant 0 : i32
    return %arg0, %c0_i32 : i32, i32
  }
  func.func @transform_1(%arg0: i32) -> (i32, i32) {
    %c0_i32 = arith.constant 0 : i32
    %c0_i32_0 = arith.constant 0 : i32
    return %arg0, %c0_i32 : i32, i32
  }
  func.func @transform_2(%arg0: i32) -> (i32, i32) {
    %c0_i32 = arith.constant 0 : i32
    %c0_i32_0 = arith.constant 0 : i32
    return %arg0, %c0_i32 : i32, i32
  }
  func.func @transform_3(%arg0: i32) -> (i32, i32) {
    %c0_i32 = arith.constant 0 : i32
    %c0_i32_0 = arith.constant 0 : i32
    return %arg0, %c0_i32 : i32, i32
  }
  func.func @transform_4(%arg0: i32) -> (i32, i32, i32) {
    %c0_i32 = arith.constant 0 : i32
    %c0_i32_0 = arith.constant 0 : i32
    %c0_i32_1 = arith.constant 0 : i32
    %c0_i32_2 = arith.constant 0 : i32
    return %c0_i32, %c0_i32_0, %c0_i32_1 : i32, i32, i32
  }
  func.func @transform_5(%arg0: i32) -> (i32, i32, i32) {
    %c0_i32 = arith.constant 0 : i32
    %c0_i32_0 = arith.constant 0 : i32
    %c0_i32_1 = arith.constant 0 : i32
    %c0_i32_2 = arith.constant 0 : i32
    return %c0_i32, %c0_i32_0, %c0_i32_1 : i32, i32, i32
  }
  func.func @transform_6(%arg0: i32) -> (i32, i32, i32) {
    %c0_i32 = arith.constant 0 : i32
    %c0_i32_0 = arith.constant 0 : i32
    %c0_i32_1 = arith.constant 0 : i32
    %c0_i32_2 = arith.constant 0 : i32
    return %c0_i32, %c0_i32_0, %c0_i32_1 : i32, i32, i32
  }
  func.func @transform_7(%arg0: i32) -> (i32, i32, i32) {
    %c0_i32 = arith.constant 0 : i32
    %c0_i32_0 = arith.constant 0 : i32
    %c0_i32_1 = arith.constant 0 : i32
    %c0_i32_2 = arith.constant 0 : i32
    return %c0_i32, %c0_i32_0, %c0_i32_1 : i32, i32, i32
  }
  func.func @transform_8(%arg0: i32) -> (i32, i32) {
    %c0_i32 = arith.constant 0 : i32
    %c0_i32_0 = arith.constant 0 : i32
    return %arg0, %c0_i32 : i32, i32
  }
  func.func @transform_9(%arg0: i32) -> (i32, i32) {
    %c0_i32 = arith.constant 0 : i32
    %c0_i32_0 = arith.constant 0 : i32
    return %arg0, %c0_i32 : i32, i32
  }
  func.func @transform_10(%arg0: i32) -> (i32, i32) {
    %c0_i32 = arith.constant 0 : i32
    %c0_i32_0 = arith.constant 0 : i32
    return %arg0, %c0_i32 : i32, i32
  }
}

</mosaic_0001>

<bundles_post_ra>
// kernel: tpu_custom_call.1
= control target key start
LH: loop header
LB: loop body
LE: loop exit
PB: predicated region body
PF: predicated region fallthrough
CT: control target
= control target key end

     0   :  { %s3897_s0 = inlined_call_operand.hbm [shape: f32[16,128], index: 0, kind: input, shape index: {}]   ;;  %s3898_s1 = inlined_call_operand.hbm [shape: f32[16,128], index: 1, kind: input, shape index: {}]   ;;  %s3899_s2 = inlined_call_operand.hbm [shape: f32[16,128], index: 2, kind: input, shape index: {}]   ;;  %s3900_s3 = inlined_call_operand.hbm [shape: f32[16,128], index: 3, kind: input, shape index: {}]   ;;  %s3901_s4 = inlined_call_operand.hbm [shape: f32[3,128,384], index: 4, kind: input, shape index: {}]   ;;  %s3902_s5 = inlined_call_operand.hbm [shape: f32[3,128,384], index: 5, kind: input, shape index: {}]   ;;  %s3903_s6 = inlined_call_operand.vmem [shape: f32[3,1,384], index: 6, kind: input, shape index: {}]   ;;  %s3904_s7 = inlined_call_operand.vmem [shape: f32[3,1,384], index: 7, kind: input, shape index: {}]   ;;  %s3905_s8 = inlined_call_operand.hbm [shape: f32[16,128], index: 8, kind: output, shape index: {0}]   ;;  %s3906_s9 = inlined_call_operand.hbm [shape: f32[16,128], index: 9, kind: output, shape index: {1}]   ;;  %s3907_s10 = inlined_call_operand.hbm [shape: f32[16,128], index: 10, kind: output, shape index: {2}]  }
   0x1   :  { %3933 = sst [smem:[#allocation29_spill]] %s3897_s0 }
   0x2   :  { %3934 = sst [smem:[#allocation30_spill]] %s3898_s1 }
   0x3   :  { %3935 = sst [smem:[#allocation31_spill]] %s3901_s4 }
   0x4   :  { %3936 = sst [smem:[#allocation32_spill]] %s3905_s8 }
   0x5   :  { %3937 = sst [smem:[#allocation33_spill]] %s3906_s9 }
   0x6   :  { %3938 = sst [smem:[#allocation34_spill]] %s3907_s10 }
   0x7   :  { %16 = vsyncpa [#allocation3], 0 }
   0x8   :  { %18 = vsyncpa [#allocation3 + $0x1], 0 }
   0x9   :  { %19 = vsyncpa [#allocation6], 0 }
   0xa   :  { %21 = vsyncpa [#allocation6 + $0x1], 0 }
   0xb   :  { %22 = vsyncpa [#allocation9], 0 }
   0xc   :  { %24 = vsyncpa [#allocation9 + $0x1], 0 }
   0xd   :  { %25 = vsyncpa [#allocation12], 0 }
   0xe   :  { %26 = vsyncpa [#allocation4], 0 }
   0xf   :  { %28 = vsyncpa [#allocation4 + $0x1], 0 }
  0x10   :  { %29 = vsyncpa [#allocation15], 0 }
  0x11   :  { %31 = vsyncpa [#allocation15 + $0x1], 0  ;;  %s3336_s13 = smov 0   ;;  %s3338_s14 = smov 0  }
  0x12   :  { %s3340_s15 = smov 0   ;;  %s3342_s16 = smov 0  }
  0x13 LB: > { %3939 = sst [smem:[#allocation24_spill]] %s3253_s13  ;;  %s3357_s17 = sadd.s32 4294967295, %s3265_s16   ;;  %s3265_s16 = sphi %s3342_s16, %s3983_s16   ;;  %s3261_s15 = sphi %s3340_s15, %s3987_s15   ;;  %s3257_s14 = sphi %s3338_s14, %s3986_s14   ;;  %s3253_s13 = sphi %s3336_s13, %s3985_s13  }
  0x14   : > { %s3908_s18 = sadd.s32 4294967294, %s3265_s16   ;;  %p57_p0 = scmp.ne.s32.totalorder %s3257_s14, %s3253_s13 }
  0x15   : > { %p3909_p1 = scmp.eq.s32.totalorder %s3357_s17, 0  ;;  %p249_p3 = scmp.eq.s32.totalorder %s3908_s18, 1 }
  0x16   : > { %p2114_p5 = scmp.ge.s32.totalorder %s3265_s16, 1  ;;  %p308_p7 = scmp.lt.s32.totalorder %s3265_s16, 3 }
  0x17   : > { %p3368_p4 = por %p3909_p1, %p57_p0  ;;  %p3373_p6 = por %p249_p3, %p57_p0 }
  0x18   : > { %p3378_p8 = pnand %p2114_p5, %p308_p7  ;;  %s3267_s22 = smov [#allocation10]  }
  0x19   : > { %s3940_s19 = scalar_select %p3368_p4, 1, 0 }
  0x1a   : > { %s3941_s20 = scalar_select %p3373_p6, 1, 0 }
  0x1b   : > { %s3943_s21 = scalar_select %p3378_p8, 1, 0 }
  0x1c   : > { %3942 = sst [smem:[#allocation25_spill]] %s3941_s20  ;;  %s320_s23 = sshll.u32 %s3267_s22, 4  ;;  %s3382_s23 = int_to_ptr.vmem [resolvable:$true] %s320_s23 }
  0x1d   : > { %p2842_p9 = pneg %p3378_p8  ;;  %s3394_s25 = sadd.s32 1, %s3265_s16  }
  0x1e   : > { %3945 = sst [smem:[#allocation26_spill]] %s3394_s25  ;;  %s44_s26 = sadd.s32 1, %s3261_s15 }
  0x1f   : > { %p3389_p11 = pnand %p2842_p9, %p3909_p1  ;;  %s41_s27 = ssub.s32 %s3265_s16, %s3394_s25 }
  0x20   : > { %s3946_s4 = sld [smem:[#allocation31_spill]] }
  0x21   : > { %s3944_s24 = scalar_select %p3389_p11, 1, 0 }
  0x22   : > { %p3918_p13 = pneg %p3389_p11 }
  0x26   : > { %s2947_s30 = scalar_lea.hbm %s3946_s4, 18432 }
  0x27   : > { %p2948_p12 = scmp.ne.s32.totalorder %s3946_s4, %s2947_s30  ;;  %p2954_p5 = scmp.lt.u32.totalorder %s2947_s30, %s3946_s4 }
  0x29   : > { %p2950_p0 = pnand %p3918_p13, %p2948_p12 }
  0x2b   : > { %p2951_p3 = pneg %p2950_p0 }
  0x2d   : > { %p2956_p7 = pnand %p2954_p5, %p2951_p3 }
  0x2f   : > { %2959 = shalt.err (!%p2956_p7)
}
  0x30   : > { %s2960_s28 = scalar_lea.vmem %s3382_s23, 18432  ;;  %p2968_p2 = scmp.lt.s32.totalorder %s3382_s23, %s3382_s23 }
  0x31   : > { %p2961_p9 = scmp.ne.s32.totalorder %s3382_s23, %s2960_s28  ;;  %p2969_p12 = scmp.lt.s32.totalorder %s2960_s28, %s2960_s28 }
  0x33   : > { %p2963_p10 = pnand %p2961_p9, %p3918_p13  ;;  %p2970_p0 = por %p2969_p12, %p2968_p2 }
  0x35   : > { %p2964_p1 = pneg %p2963_p10 }
  0x37   : > { %p2971_p6 = pnand %p2970_p0, %p2964_p1 }
  0x39   : > { %2974 = shalt.err (!%p2971_p6)
}
  0x3a   : > { %s3912_s18 = smov 384   ;;  %s3913_s29 = smov 24  }
  0x3b   : > { %2845 = dma.hbm_to_vmem [thread:$0]  (!%p3389_p11), %s3946_s4, 18432, %s3382_s23, [#allocation9], %s3912_s18, %s3912_s18, %s3913_s29  }
  0x3c   : > { %p42_p1 = scmp.eq.s32.totalorder %s41_s27, 0  ;;  %p51_p2 = scmp.ne.s32.totalorder %s3261_s15, %s3257_s14 }
  0x3d   : > { %p52_p6 = scmp.eq.s32.totalorder %s3265_s16, 0  ;;  %p2874_p10 = scmp.lt.s32.totalorder %s3265_s16, 2 }
  0x3e   : > { %s3434_s12 = scalar_select %p42_p1, %s3261_s15, %s44_s26  }
  0x3f   : > { %p53_p3 = por %p52_p6, %p51_p2  ;;  %p3948_p5 = scmp.eq.s32.totalorder %s3357_s17, 1 }
  0x40   : > { %3947 = sst [smem:[#allocation27_spill]] %s3434_s12  ;;  %s3914_s28 = sand.u32 1, %s3261_s15  }
  0x41   : > { %p3438_p7 = por %p3948_p5, %p51_p2  ;;  %s3444_s25 = sshll.u32 %s3265_s16, 7 }
  0x42   : > { %s3448_s30 = sshll.u32 %s3914_s28, 3  ;;  %p3450_p9 = pnand %p2874_p10, %p53_p3 }
  0x43   : > { %s3949_s22 = scalar_select %p3438_p7, 1, 0 }
  0x44   : > { %s3951_s23 = scalar_select %p3450_p9, 1, 0 }
  0x45   : > { %3950 = sst [smem:[#allocation28_spill]] %s3949_s22  ;;  %s3920_s26 = sand.u32 1, %s3265_s16  }
  0x46   : > { %s3952_s1 = sld [smem:[#allocation30_spill]]  ;;  %s375_s29 = scalar_lea.vmem [#allocation5], %s3448_s30 }
  0x47   : > { %s382_s4 = sshll.u32 %s375_s29, 4  ;;  %s3466_s28 = scalar_lea.sflag [#allocation6], %s3920_s26  ;;  %s3462_s4 = int_to_ptr.vmem [resolvable:$true] %s382_s4 }
  0x48   : > { %p3472_p0 = pneg %p3450_p9 }
  0x4a   : > { %s3953_s20 = scalar_select %p3472_p0, 1, 0 }
  0x4c   : > { %s3459_s18 = scalar_lea.hbm %s3952_s1, %s3444_s25  ;;  %s2980_s29 = scalar_lea.hbm %s3952_s1, 256 }
  0x4d   : > { %s2975_s12 = scalar_lea.hbm %s3459_s18, 128  ;;  %p2981_p6 = scmp.lt.u32.totalorder %s3459_s18, %s3952_s1 }
  0x4e   : > { %p2976_p12 = scmp.ne.s32.totalorder %s3459_s18, %s2975_s12  ;;  %p2982_p10 = scmp.lt.u32.totalorder %s2980_s29, %s2975_s12 }
  0x4f   : > { %p2984_p5 = scmp.lt.u32.totalorder %s2975_s12, %s3459_s18 }
  0x50   : > { %p2978_p1 = pnand %p3472_p0, %p2976_p12  ;;  %p2983_p3 = por %p2982_p10, %p2981_p6 }
  0x52   : > { %p2979_p2 = pneg %p2978_p1  ;;  %p2985_p13 = por %p2984_p5, %p2983_p3 }
  0x54   : > { %p2986_p7 = pnand %p2985_p13, %p2979_p2 }
  0x56   : > { %2989 = shalt.err (!%p2986_p7)
}
  0x57   : > { %s2990_s26 = scalar_lea.vmem %s3462_s4, 128  ;;  %s3270_s27 = smov [#allocation5]  }
  0x58   : > { %p2991_p12 = scmp.ne.s32.totalorder %s3462_s4, %s2990_s26  ;;  %s2995_s11 = sshll.u32 %s3270_s27, 4  ;;  %s2996_s11 = int_to_ptr.vmem [resolvable:$false] %s2995_s11 }
  0x59   : > { %s2997_s10 = scalar_lea.vmem %s2996_s11, 256  ;;  %p2998_p8 = scmp.lt.s32.totalorder %s3462_s4, %s2996_s11 }
  0x5a   : > { %p2993_p1 = pnand %p2991_p12, %p3472_p0  ;;  %p2999_p11 = scmp.lt.s32.totalorder %s2997_s10, %s2990_s26 }
  0x5c   : > { %p2994_p4 = pneg %p2993_p1  ;;  %p3000_p6 = por %p2999_p11, %p2998_p8 }
  0x5e   : > { %p3001_p10 = pnand %p3000_p6, %p2994_p4 }
  0x60   : > { %3004 = shalt.err (!%p3001_p10)
}
  0x61   : > { %2855 = dma.hbm_to_vmem [thread:$0]  (!%p3450_p9), %s3459_s18, 128, %s3462_s4, %s3466_s28  }
  0x62   : > { %s3271_s13 = smov [#allocation11]   ;;  %s3954_s0 = sld [smem:[#allocation29_spill]] }
  0x63   : > { %s333_s12 = sshll.u32 %s3271_s13, 4  ;;  %s3005_s10 = scalar_lea.hbm %s3902_s5, 18432  ;;  %s334_s12 = int_to_ptr.vmem [resolvable:$true] %s333_s12 }
  0x64   : > { %p3006_p4 = scmp.ne.s32.totalorder %s3902_s5, %s3005_s10  ;;  %p3955_p8 = scmp.ne.s32.totalorder %s3944_s24, 0 }
  0x65   : > { %p3012_p2 = scmp.lt.u32.totalorder %s3005_s10, %s3902_s5 }
  0x66   : > { %p3956_p11 = pneg %p3955_p8 }
  0x68   : > { %s3500_s1 = scalar_lea.hbm %s3954_s0, %s3444_s25  ;;  %p3008_p13 = pnand %p3006_p4, %p3956_p11 }
  0x6a   : > { %p3009_p7 = pneg %p3008_p13 }
  0x6c   : > { %p3014_p3 = pnand %p3012_p2, %p3009_p7 }
  0x6e   : > { %3017 = shalt.err (!%p3014_p3)
}
  0x6f   : > { %s3018_s13 = scalar_lea.vmem %s334_s12, 18432  ;;  %p3957_p12 = pmov %p3956_p11 }
  0x70   : > { %p3019_p5 = scmp.ne.s32.totalorder %s334_s12, %s3018_s13  ;;  %p3026_p10 = scmp.lt.s32.totalorder %s334_s12, %s334_s12 }
  0x71   : > { %p3027_p9 = scmp.lt.s32.totalorder %s3018_s13, %s3018_s13 }
  0x72   : > { %p3021_p1 = pnand %p3019_p5, %p3957_p12 }
  0x73   : > { %p3028_p0 = por %p3027_p9, %p3026_p10 }
  0x74   : > { %p3022_p6 = pneg %p3021_p1 }
  0x76   : > { %p3029_p4 = pnand %p3028_p0, %p3022_p6 }
  0x78   : > { %3032 = shalt.err (!%p3029_p4)
}
  0x79   : > { %s3958_s8 = smov 24   ;;  %s3959_s9 = smov 384  }
  0x7a   : > { %2848 = dma.hbm_to_vmem [thread:$0]  (!%p3955_p8), %s3902_s5, 18432, %s334_s12, [#allocation12], %s3959_s9, %s3959_s9, %s3958_s8  }
  0x7b   : > { %s357_s26 = scalar_lea.vmem [#allocation2], %s3448_s30  ;;  %s3532_s4 = scalar_lea.hbm %s3899_s2, %s3444_s25 }
  0x7c   : > { %s364_s11 = sshll.u32 %s357_s26, 4  ;;  %s3960_s18 = sand.u32 1, %s3261_s15   ;;  %s3526_s11 = int_to_ptr.vmem [resolvable:$true] %s364_s11 }
  0x7d   : > { %s354_s13 = scalar_lea.sflag [#allocation3], %s3960_s18  ;;  %s3033_s29 = scalar_lea.hbm %s3500_s1, 128 }
  0x7e   : > { %p3034_p9 = scmp.ne.s32.totalorder %s3500_s1, %s3033_s29  ;;  %p3961_p0 = scmp.ne.s32.totalorder %s3953_s20, 0 }
  0x7f   : > { %s3038_s12 = scalar_lea.hbm %s3954_s0, 256  ;;  %p3039_p8 = scmp.lt.u32.totalorder %s3500_s1, %s3954_s0 }
  0x80   : > { %p3036_p11 = pnand %p3034_p9, %p3961_p0  ;;  %p3040_p7 = scmp.lt.u32.totalorder %s3038_s12, %s3033_s29 }
  0x81   : > { %p3042_p3 = scmp.lt.u32.totalorder %s3033_s29, %s3500_s1 }
  0x82   : > { %p3037_p13 = pneg %p3036_p11  ;;  %p3041_p2 = por %p3040_p7, %p3039_p8 }
  0x84   : > { %p3043_p5 = por %p3042_p3, %p3041_p2 }
  0x86   : > { %p3044_p12 = pnand %p3043_p5, %p3037_p13 }
  0x88   : > { %3047 = shalt.err (!%p3044_p12)
}
  0x89   : > { %s3048_s26 = scalar_lea.vmem %s3526_s11, 128  ;;  %s3272_s22 = smov [#allocation2]  }
  0x8a   : > { %p3049_p1 = scmp.ne.s32.totalorder %s3526_s11, %s3048_s26  ;;  %s3053_s24 = sshll.u32 %s3272_s22, 4  ;;  %s3054_s24 = int_to_ptr.vmem [resolvable:$false] %s3053_s24 }
  0x8b   : > { %s3055_s10 = scalar_lea.vmem %s3054_s24, 256  ;;  %p3056_p4 = scmp.lt.s32.totalorder %s3526_s11, %s3054_s24 }
  0x8c   : > { %p3051_p6 = pnand %p3049_p1, %p3961_p0  ;;  %p3057_p9 = scmp.lt.s32.totalorder %s3055_s10, %s3048_s26 }
  0x8e   : > { %p3052_p10 = pneg %p3051_p6  ;;  %p3058_p11 = por %p3057_p9, %p3056_p4 }
  0x90   : > { %p3059_p8 = pnand %p3058_p11, %p3052_p10 }
  0x92   : > { %3062 = shalt.err (!%p3059_p8)
}
  0x93   : > { %p3962_p13 = scmp.ne.s32.totalorder %s3951_s23, 0  ;;  %s393_s18 = scalar_lea.vmem [#allocation7], %s3448_s30 }
  0x94   : > { %s400_s29 = sshll.u32 %s393_s18, 4  ;;  %s3562_s8 = scalar_lea.hbm %s3900_s3, %s3444_s25  ;;  %s401_s29 = int_to_ptr.vmem [resolvable:$true] %s400_s29 }
  0x95   : > { %2852 = dma.hbm_to_vmem [thread:$0]  (!%p3962_p13), %s3500_s1, 128, %s3526_s11, %s354_s13  }
  0x96   : > { %s3063_s9 = scalar_lea.hbm %s3532_s4, 128  ;;  %s3068_s24 = scalar_lea.hbm %s3899_s2, 256 }
  0x97   : > { %p3064_p7 = scmp.ne.s32.totalorder %s3532_s4, %s3063_s9  ;;  %p3069_p5 = scmp.lt.u32.totalorder %s3532_s4, %s3899_s2 }
  0x98   : > { %p3070_p12 = scmp.lt.u32.totalorder %s3068_s24, %s3063_s9  ;;  %p3072_p6 = scmp.lt.u32.totalorder %s3063_s9, %s3532_s4 }
  0x99   : > { %p3066_p2 = pnand %p3064_p7, %p3961_p0 }
  0x9a   : > { %p3071_p1 = por %p3070_p12, %p3069_p5 }
  0x9b   : > { %p3067_p3 = pneg %p3066_p2 }
  0x9c   : > { %p3073_p10 = por %p3072_p6, %p3071_p1 }
  0x9e   : > { %p3074_p4 = pnand %p3073_p10, %p3067_p3 }
  0xa0   : > { %3077 = shalt.err (!%p3074_p4)
}
  0xa1   : > { %s3078_s1 = scalar_lea.vmem %s401_s29, 128  ;;  %s3273_s25 = smov [#allocation7]  }
  0xa2   : > { %p3079_p9 = scmp.ne.s32.totalorder %s401_s29, %s3078_s1  ;;  %s3083_s11 = sshll.u32 %s3273_s25, 4  ;;  %s3084_s11 = int_to_ptr.vmem [resolvable:$false] %s3083_s11 }
  0xa3   : > { %s3085_s13 = scalar_lea.vmem %s3084_s11, 256  ;;  %p3086_p7 = scmp.lt.s32.totalorder %s401_s29, %s3084_s11 }
  0xa4   : > { %p3081_p11 = pnand %p3079_p9, %p3961_p0  ;;  %p3087_p2 = scmp.lt.s32.totalorder %s3085_s13, %s3078_s1 }
  0xa6   : > { %p3082_p8 = pneg %p3081_p11  ;;  %p3088_p13 = por %p3087_p2, %p3086_p7 }
  0xa8   : > { %p3089_p5 = pnand %p3088_p13, %p3082_p8 }
  0xaa   : > { %3092 = shalt.err (!%p3089_p5)
}
  0xab   : > { %p3963_p12 = scmp.ne.s32.totalorder %s3951_s23, 0  ;;  %s411_s0 = scalar_lea.vmem [#allocation8], %s3448_s30 }
  0xac   : > { %s418_s18 = sshll.u32 %s411_s0, 4  ;;  %s3964_s27 = sand.u32 1, %s3265_s16   ;;  %s419_s18 = int_to_ptr.vmem [resolvable:$true] %s418_s18 }
  0xad   : > { %2858 = dma.hbm_to_vmem [thread:$0]  (!%p3963_p12), %s3532_s4, 128, %s401_s29, %s3466_s28  }
  0xae   : > { %s408_s12 = scalar_lea.sflag [#allocation9], %s3964_s27  ;;  %s3093_s9 = scalar_lea.hbm %s3562_s8, 128 }
  0xaf   : > { %p3094_p13 = scmp.ne.s32.totalorder %s3562_s8, %s3093_s9  ;;  %s3098_s24 = scalar_lea.hbm %s3900_s3, 256 }
  0xb0   : > { %p3099_p6 = scmp.lt.u32.totalorder %s3562_s8, %s3900_s3  ;;  %p3100_p10 = scmp.lt.u32.totalorder %s3098_s24, %s3093_s9 }
  0xb1   : > { %p3096_p3 = pnand %p3094_p13, %p3961_p0  ;;  %p3102_p9 = scmp.lt.u32.totalorder %s3093_s9, %s3562_s8 }
  0xb2   : > { %p3101_p4 = por %p3100_p10, %p3099_p6 }
  0xb3   : > { %p3097_p1 = pneg %p3096_p3 }
  0xb4   : > { %p3103_p11 = por %p3102_p9, %p3101_p4 }
  0xb6   : > { %p3104_p8 = pnand %p3103_p11, %p3097_p1 }
  0xb8   : > { %3107 = shalt.err (!%p3104_p8)
}
  0xb9   : > { %s3108_s28 = scalar_lea.vmem %s419_s18, 128  ;;  %s3274_s30 = smov [#allocation8]  }
  0xba   : > { %p3109_p7 = scmp.ne.s32.totalorder %s419_s18, %s3108_s28  ;;  %s3113_s4 = sshll.u32 %s3274_s30, 4  ;;  %s3114_s4 = int_to_ptr.vmem [resolvable:$false] %s3113_s4 }
  0xbb   : > { %s3115_s29 = scalar_lea.vmem %s3114_s4, 256  ;;  %p3116_p13 = scmp.lt.s32.totalorder %s419_s18, %s3114_s4 }
  0xbc   : > { %p3111_p2 = pnand %p3109_p7, %p3961_p0  ;;  %p3117_p3 = scmp.lt.s32.totalorder %s3115_s29, %s3108_s28 }
  0xbe   : > { %p3112_p5 = pneg %p3111_p2  ;;  %p3118_p12 = por %p3117_p3, %p3116_p13 }
  0xc0   : > { %p3119_p6 = pnand %p3118_p12, %p3112_p5 }
  0xc2   : > { %3122 = shalt.err (!%p3119_p6)
}
  0xc3   : > { %p3965_p10 = scmp.ne.s32.totalorder %s3951_s23, 0  ;;  %p3966_p1 = scmp.ne.s32.totalorder %s3943_s21, 0 }
  0xc4   : > { %s3605_s20 = sand.u32 (!%p3966_p1), 1, %s3257_s14   ;;  %p3967_p0 = scmp.ne.s32.totalorder (!%p3966_p1), %s3940_s19, 0 }
  0xc5   : > { %2861 = dma.hbm_to_vmem [thread:$0]  (!%p3965_p10), %s3562_s8, 128, %s419_s18, %s408_s12  }
  0xc6   : > { %427 = sbr.rel (%p3966_p1) target bundleno = 1148 (0x47c), region = 52  ;;  %s3608_s25 = sshll.u32 (!%p3966_p1), %s3605_s20, 3 }
  0xc7   : > { %s430_s11 = scalar_lea.sflag (!%p3966_p1), [#allocation3], %s3605_s20  ;;  %s433_s13 = scalar_lea.vmem (!%p3966_p1), [#allocation2], %s3608_s25 }
  0xcd   : > { %3224 = dma.done.wait (%p3967_p0), %s430_s11, 128  }
  0xce   : > { %3226 = vsyncadd (%p3967_p0), %s430_s11, 4294967168  ;;  %s3617_s21 = sand.u32 1, %s3357_s17   ;;  %s442_s8 = scalar_lea.vmem [#allocation5], %s3608_s25 }
  0xcf   : > { %s439_s23 = scalar_lea.sflag [#allocation6], %s3617_s21 }
  0xd0   : > { %3228 = dma.done.wait (%p3967_p0), %s439_s23, 256  }
  0xd1   : > { %3230 = vsyncadd (%p3967_p0), %s439_s23, 4294967040  ;;  %s451_s0 = scalar_lea.vmem [#allocation7], %s3608_s25  ;;  %s457_s18 = scalar_lea.sflag [#allocation9], %s3617_s21 }
  0xd2   : > { %s460_s27 = scalar_lea.vmem [#allocation8], %s3608_s25 }
  0xd3   : > { %3232 = dma.done.wait (%p3967_p0), %s457_s18, 128  }
  0xd4   : > { %3234 = vsyncadd (%p3967_p0), %s457_s18, 4294967168  ;;  %p3968_p12 = scmp.eq.s32.totalorder %s3357_s17, 0 }
  0xd6   : > { %3236 = dma.done.wait (%p3968_p12), [#allocation9], 18432   ;;  %p3969_p4 = pmov %p3968_p12 }
  0xd8   : > { %3238 = vsyncadd (%p3969_p4), [#allocation9], 4294948864  ;;  %p3970_p9 = pmov %p3969_p4 }
  0xd9   : > { %p3971_p11 = pmov %p3969_p4 }
  0xda   : > { %3240 = dma.done.wait (%p3970_p9), [#allocation12], 18432  }
  0xdb   : > { %3242 = vsyncadd (%p3971_p11), [#allocation12], 4294948864  ;;  %v3275_v0 = vmov 0.0|0.0   ;;  %v3276_v1 = vmov 0.0   ;;  %vm3277_vm0 = vmmov 0   ;;  %v535_v2 = vld [vmem:[#allocation10 + $0x8] sm:$0xff] }
  0xdc   : > { %2498 = vmatprep.subr.bf16.mxu1 %v3275_v0  ;;  %712 = vmatprep.mubr.f32.mxu0 %v3276_v1  ;;  %v538_v3 = vld [vmem:[#allocation10 + $0x20] sm:$0xff]  ;;  %v537_v6 = vld [vmem:[#allocation10 + $0x18] sm:$0xff]  ;;  %v544_v8 = vld [vmem:[#allocation10 + $0x50] sm:$0xff]  ;;  %s515_s22 = scalar_lea.vmem [#allocation13], %s3608_s25  ;;  %s522_s30 = scalar_lea.vmem [#allocation14], %s3608_s25 }
  0xdd   : > { %2288 = vmatprep.mubr.msk.f32.mxu1 %vm3277_vm0, %v3276_v1  ;;  %v534_v4 = vld [vmem:[#allocation10] sm:$0xff]  ;;  %v2466_v5 = vpack.c.bf16 %v538_v3, %v535_v2  ;;  %v541_v7 = vld [vmem:[#allocation10 + $0x38] sm:$0xff]  ;;  %v540_v11 = vld [vmem:[#allocation10 + $0x30] sm:$0xff]  ;;  %s3972_s4 = sld [smem:[#allocation28_spill]]  ;;  %s3781_s29 = sshll.u32 %s3357_s17, 7 }
  0xde   : > { %v2468_v9 = vpack.c.bf16 %v537_v6, %v534_v4  ;;  %v2470_v10 = vpack.c.bf16 %v544_v8, %v541_v7  ;;  %v543_v12 = vld [vmem:[#allocation10 + $0x48] sm:$0xff]  ;;  %v550_v14 = vld [vmem:[#allocation10 + $0x80] sm:$0xff]  ;;  %v549_v18 = vld [vmem:[#allocation10 + $0x78] sm:$0xff]  ;;  %s3973_s23 = sld [smem:[#allocation33_spill]]  ;;  %s1853_s18 = scalar_lea.sflag [#allocation15], %s3617_s21 }
  0xdf   : > { %v547_v13 = vld [vmem:[#allocation10 + $0x68] sm:$0xff]  ;;  %2467 = vmatprep.subr.bf16.mxu0 %v2466_v5  ;;  %v2472_v15 = vpack.c.bf16 %v543_v12, %v540_v11  ;;  %v546_v17 = vld [vmem:[#allocation10 + $0x60] sm:$0xff]  ;;  %v553_v19 = vld [vmem:[#allocation10 + $0x98] sm:$0xff] }
  0xe0   : > { %2469 = vmatpush1.bf16.msra.mxu0 %v2468_v9  ;;  %v2474_v16 = vpack.c.bf16 %v550_v14, %v547_v13  ;;  %v556_v20 = vld [vmem:[#allocation10 + $0xb0] sm:$0xff]  ;;  %v2476_v21 = vpack.c.bf16 %v549_v18, %v546_v17  ;;  %v555_v24 = vld [vmem:[#allocation10 + $0xa8] sm:$0xff]  ;;  %v562_v28 = vld [vmem:[#allocation10 + $0xe0] sm:$0xff] }
  0xe1   : > { %2471 = vmatprep.subr.bf16.mxu0 %v2470_v10  ;;  %v552_v22 = vld [vmem:[#allocation10 + $0x90] sm:$0xff]  ;;  %v2478_v23 = vpack.c.bf16 %v556_v20, %v553_v19  ;;  %v539_v26 = vld [vmem:[#allocation10 + $0x28] sm:$0xff]  ;;  %v542_v30 = vld [vmem:[#allocation10 + $0x40] sm:$0xff] }
  0xe2   : > { %v536_v25 = vld [vmem:[#allocation10 + $0x10] sm:$0xff]  ;;  %v559_v27 = vld [vmem:[#allocation10 + $0xc8] sm:$0xff]  ;;  %v545_v31 = vld [vmem:[#allocation10 + $0x58] sm:$0xff]  ;;  %v2480_v32 = vpack.c.bf16 %v555_v24, %v552_v22 }
  0xe3   : > { %v2499_v29 = vpack.c.bf16 %v539_v26, %v536_v25  ;;  %v2502_v33 = vpack.c.bf16 %v545_v31, %v542_v30  ;;  %v2482_v34 = vpack.c.bf16 %v562_v28, %v559_v27  ;;  %v558_v35 = vld [vmem:[#allocation10 + $0xc0] sm:$0xff]  ;;  %v561_v36 = vld [vmem:[#allocation10 + $0xd8] sm:$0xff]  ;;  %v548_v37 = vld [vmem:[#allocation10 + $0x70] sm:$0xff]  ;;  %p3974_p7 = scmp.ne.s32.totalorder %s3972_s4, 0 }
  0xe4   : > { %2473 = vmatpush1.bf16.msra.mxu0 %v2472_v15  ;;  %v565_v38 = vld [vmem:[#allocation10 + $0xf8] sm:$0xff]  ;;  %v568_v39 = vld [vmem:[#allocation10 + $0x110] sm:$0xff]  ;;  %v551_v40 = vld [vmem:[#allocation10 + $0x88] sm:$0xff]  ;;  %v2484_v41 = vpack.c.bf16 %v561_v36, %v558_v35 }
  0xe5   : > { %2475 = vmatprep.subr.bf16.mxu0 %v2474_v16  ;;  %2500 = vmatpush3.bf16.msra.mxu1 %v2499_v29  ;;  %v564_v42 = vld [vmem:[#allocation10 + $0xf0] sm:$0xff]  ;;  %v2505_v43 = vpack.c.bf16 %v551_v40, %v548_v37  ;;  %v2486_v44 = vpack.c.bf16 %v568_v39, %v565_v38  ;;  %v567_v45 = vld [vmem:[#allocation10 + $0x108] sm:$0xff]  ;;  %v554_v46 = vld [vmem:[#allocation10 + $0xa0] sm:$0xff] }
  0xe6   : > { %2501 = vmatprep.subr.bf16.mxu1 %v3275_v0  ;;  %v557_v47 = vld [vmem:[#allocation10 + $0xb8] sm:$0xff]  ;;  %v571_v48 = vld [vmem:[#allocation10 + $0x128] sm:$0xff]  ;;  %v574_v49 = vld [vmem:[#allocation10 + $0x140] sm:$0xff]  ;;  %v2488_v50 = vpack.c.bf16 %v567_v45, %v564_v42 }
  0xe7   : > { %v570_v51 = vld [vmem:[#allocation10 + $0x120] sm:$0xff]  ;;  %v2508_v52 = vpack.c.bf16 %v557_v47, %v554_v46  ;;  %v2490_v53 = vpack.c.bf16 %v574_v49, %v571_v48  ;;  %v573_v54 = vld [vmem:[#allocation10 + $0x138] sm:$0xff]  ;;  %v560_v55 = vld [vmem:[#allocation10 + $0xd0] sm:$0xff] }
  0xe8   : > { %2477 = vmatpush1.bf16.msra.mxu0 %v2476_v21  ;;  %v563_v56 = vld [vmem:[#allocation10 + $0xe8] sm:$0xff]  ;;  %v577_v57 = vld [vmem:[#allocation10 + $0x158] sm:$0xff]  ;;  %v580_v58 = vld [vmem:[#allocation10 + $0x170] sm:$0xff]  ;;  %v2492_v59 = vpack.c.bf16 %v573_v54, %v570_v51 }
  0xe9   : > { %2479 = vmatprep.subr.bf16.mxu0 %v2478_v23  ;;  %2503 = vmatpush3.bf16.msra.mxu1 %v2502_v33  ;;  %v576_v60 = vld [vmem:[#allocation10 + $0x150] sm:$0xff]  ;;  %v2511_v61 = vpack.c.bf16 %v563_v56, %v560_v55  ;;  %v2494_v62 = vpack.c.bf16 %v580_v58, %v577_v57  ;;  %v579_v63 = vld [vmem:[#allocation10 + $0x168] sm:$0xff]  ;;  %v566_v2 = vld [vmem:[#allocation10 + $0x100] sm:$0xff] }
  0xea   : > { %2504 = vmatprep.subr.bf16.mxu1 %v3275_v0  ;;  %v569_v3 = vld [vmem:[#allocation10 + $0x118] sm:$0xff]  ;;  %v583_v4 = vld [vmem:[#allocation11 + $0x8] sm:$0xff]  ;;  %v586_v5 = vld [vmem:[#allocation11 + $0x20] sm:$0xff]  ;;  %v2496_v6 = vpack.c.bf16 %v579_v63, %v576_v60 }
  0xeb   : > { %v582_v7 = vld [vmem:[#allocation11] sm:$0xff]  ;;  %v2514_v8 = vpack.c.bf16 %v569_v3, %v566_v2  ;;  %v2522_v9 = vpack.c.bf16 %v586_v5, %v583_v4  ;;  %v585_v10 = vld [vmem:[#allocation11 + $0x18] sm:$0xff]  ;;  %v572_v11 = vld [vmem:[#allocation10 + $0x130] sm:$0xff] }
  0xec   : > { %2481 = vmatpush1.bf16.msra.mxu0 %v2480_v32  ;;  %v575_v12 = vld [vmem:[#allocation10 + $0x148] sm:$0xff]  ;;  %v589_v13 = vld [vmem:[#allocation11 + $0x38] sm:$0xff]  ;;  %v592_v14 = vld [vmem:[#allocation11 + $0x50] sm:$0xff]  ;;  %v2524_v16 = vpack.c.bf16 %v585_v10, %v582_v7 }
  0xed   : > { %2483 = vmatprep.subr.bf16.mxu0 %v2482_v34  ;;  %2506 = vmatpush3.bf16.msra.mxu1 %v2505_v43  ;;  %v3651_v15 = vld [vmem:[%s433_s13] sm:$0xff]  ;;  %v588_v17 = vld [vmem:[#allocation11 + $0x30] sm:$0xff]  ;;  %v2517_v18 = vpack.c.bf16 %v575_v12, %v572_v11  ;;  %v2526_v19 = vpack.c.bf16 %v592_v14, %v589_v13  ;;  %v581_v22 = vld [vmem:[#allocation10 + $0x178] sm:$0xff] }
  0xee   : > { %2507 = vmatprep.subr.bf16.mxu1 %v3275_v0  ;;  %v591_v20 = vld [vmem:[#allocation11 + $0x48] sm:$0xff]  ;;  %v578_v21 = vld [vmem:[#allocation10 + $0x160] sm:$0xff]  ;;  %v597_v29 = vld [vmem:[#allocation11 + $0x78] sm:$0xff] }
  0xef   : > { %v595_v23 = vld [vmem:[#allocation11 + $0x68] sm:$0xff]  ;;  %v598_v24 = vld [vmem:[#allocation11 + $0x80] sm:$0xff]  ;;  %v2528_v25 = vpack.c.bf16 %v591_v20, %v588_v17  ;;  %v2520_v27 = vpack.c.bf16 %v581_v22, %v578_v21  ;;  %v584_v30 = vld [vmem:[#allocation11 + $0x10] sm:$0xff] }
  0xf0   : > { %2485 = vmatpush1.bf16.msra.mxu0 %v2484_v41  ;;  %v594_v26 = vld [vmem:[#allocation11 + $0x60] sm:$0xff]  ;;  %v2530_v28 = vpack.c.bf16 %v598_v24, %v595_v23  ;;  %v587_v31 = vld [vmem:[#allocation11 + $0x28] sm:$0xff]  ;;  %v601_v32 = vld [vmem:[#allocation11 + $0x98] sm:$0xff] }
  0xf1   : > { %2487 = vmatprep.subr.bf16.mxu0 %v2486_v44  ;;  %2509 = vmatpush3.bf16.msra.mxu1 %v2508_v52  ;;  %v604_v33 = vld [vmem:[#allocation11 + $0xb0] sm:$0xff]  ;;  %v2532_v34 = vpack.c.bf16 %v597_v29, %v594_v26  ;;  %v2555_v36 = vpack.c.bf16 %v587_v31, %v584_v30  ;;  %v603_v38 = vld [vmem:[#allocation11 + $0xa8] sm:$0xff]  ;;  %v590_v39 = vld [vmem:[#allocation11 + $0x40] sm:$0xff] }
  0xf2   : > { %2510 = vmatprep.subr.bf16.mxu1 %v3275_v0  ;;  %v600_v35 = vld [vmem:[#allocation11 + $0x90] sm:$0xff]  ;;  %v2534_v37 = vpack.c.bf16 %v604_v33, %v601_v32  ;;  %v593_v40 = vld [vmem:[#allocation11 + $0x58] sm:$0xff]  ;;  %v607_v41 = vld [vmem:[#allocation11 + $0xc8] sm:$0xff] }
  0xf3   : > { %v610_v42 = vld [vmem:[#allocation11 + $0xe0] sm:$0xff]  ;;  %v2536_v43 = vpack.c.bf16 %v603_v38, %v600_v35  ;;  %v2558_v45 = vpack.c.bf16 %v593_v40, %v590_v39  ;;  %v609_v47 = vld [vmem:[#allocation11 + $0xd8] sm:$0xff]  ;;  %v596_v48 = vld [vmem:[#allocation11 + $0x70] sm:$0xff] }
  0xf4   : > { %2489 = vmatpush1.bf16.msra.mxu0 %v2488_v50  ;;  %v606_v44 = vld [vmem:[#allocation11 + $0xc0] sm:$0xff]  ;;  %v2538_v46 = vpack.c.bf16 %v610_v42, %v607_v41  ;;  %v599_v49 = vld [vmem:[#allocation11 + $0x88] sm:$0xff]  ;;  %v613_v50 = vld [vmem:[#allocation11 + $0xf8] sm:$0xff] }
  0xf5   : > { %2491 = vmatprep.subr.bf16.mxu0 %v2490_v53  ;;  %2512 = vmatpush3.bf16.msra.mxu1 %v2511_v61  ;;  %v616_v51 = vld [vmem:[#allocation11 + $0x110] sm:$0xff]  ;;  %v2540_v52 = vpack.c.bf16 %v609_v47, %v606_v44  ;;  %v2561_v54 = vpack.c.bf16 %v599_v49, %v596_v48  ;;  %v615_v56 = vld [vmem:[#allocation11 + $0x108] sm:$0xff]  ;;  %v602_v57 = vld [vmem:[#allocation11 + $0xa0] sm:$0xff] }
  0xf6   : > { %2513 = vmatprep.subr.bf16.mxu1 %v3275_v0  ;;  %v612_v53 = vld [vmem:[#allocation11 + $0xf0] sm:$0xff]  ;;  %v2542_v55 = vpack.c.bf16 %v616_v51, %v613_v50  ;;  %v605_v58 = vld [vmem:[#allocation11 + $0xb8] sm:$0xff]  ;;  %v622_v60 = vld [vmem:[#allocation11 + $0x140] sm:$0xff] }
  0xf7   : > { %v2544_v61 = vpack.c.bf16 %v615_v56, %v612_v53  ;;  %v2564_v63 = vpack.c.bf16 %v605_v58, %v602_v57  ;;  %v621_v3 = vld [vmem:[#allocation11 + $0x138] sm:$0xff]  ;;  %v608_v4 = vld [vmem:[#allocation11 + $0xd0] sm:$0xff]  ;;  %v611_v5 = vld [vmem:[#allocation11 + $0xe8] sm:$0xff] }
  0xf8   : > { %2493 = vmatpush1.bf16.msra.mxu0 %v2492_v59  ;;  %v619_v59 = vld [vmem:[#allocation11 + $0x128] sm:$0xff]  ;;  %v628_v7 = vld [vmem:[#allocation11 + $0x170] sm:$0xff]  ;;  %v2567_v10 = vpack.c.bf16 %v611_v5, %v608_v4  ;;  %v614_v13 = vld [vmem:[#allocation11 + $0x100] sm:$0xff] }
  0xf9   : > { %2495 = vmatprep.subr.bf16.mxu0 %v2494_v62  ;;  %2515 = vmatpush3.bf16.msra.mxu1 %v2514_v8  ;;  %v618_v62 = vld [vmem:[#allocation11 + $0x120] sm:$0xff]  ;;  %v2546_v2 = vpack.c.bf16 %v622_v60, %v619_v59  ;;  %v627_v12 = vld [vmem:[#allocation11 + $0x168] sm:$0xff]  ;;  %v617_v14 = vld [vmem:[#allocation11 + $0x118] sm:$0xff] }
  0xfa   : > { %2516 = vmatprep.subr.bf16.mxu1 %v3275_v0  ;;  %v2548_v8 = vpack.c.bf16 %v621_v3, %v618_v62  ;;  %v2570_v17 = vpack.c.bf16 %v617_v14, %v614_v13  ;;  %v3668_v20 = vld [vmem:[%s442_s8] sm:$0xff]  ;;  %v626_v22 = vld [vmem:[#allocation11 + $0x160] sm:$0xff]  ;;  %v974_v32 = vld [vmem:[#allocation10 + $0x1a8] sm:$0xff]  ;;  %s3787_s8 = scalar_lea.hbm %s3973_s23, %s3781_s29 }
  0xfb   : > { %v629_v23 = vld [vmem:[#allocation11 + $0x178] sm:$0xff]  ;;  %v973_v26 = vld [vmem:[#allocation10 + $0x1a0] sm:$0xff]  ;;  %v971_v31 = vld [vmem:[#allocation10 + $0x190] sm:$0xff] }
  0xfc   : > { %2497 = vmatpush1.bf16.msra.mxu0 %v2496_v6  ;;  %v625_v6 = vld [vmem:[#allocation11 + $0x158] sm:$0xff]  ;;  %v2576_v24 = vpack.c.bf16 %v629_v23, %v626_v22  ;;  %v2611_v33 = vpack.c.bf16 %v974_v32, %v971_v31  ;;  %v979_v35 = vld [vmem:[#allocation10 + $0x1d0] sm:$0xff]  ;;  %v978_v38 = vld [vmem:[#allocation10 + $0x1c8] sm:$0xff] }
  0xfd   : > { %2523 = vmatprep.subr.bf16.mxu0 %v2522_v9  ;;  %2518 = vmatpush3.bf16.msra.mxu1 %v2517_v18  ;;  %v624_v9 = vld [vmem:[#allocation11 + $0x150] sm:$0xff]  ;;  %v2550_v11 = vpack.c.bf16 %v628_v7, %v625_v6  ;;  %v972_v29 = vld [vmem:[#allocation10 + $0x198] sm:$0xff]  ;;  %v977_v39 = vld [vmem:[#allocation10 + $0x1c0] sm:$0xff] }
  0xfe   : > { %2519 = vmatprep.subr.bf16.mxu1 %v3275_v0  ;;  %v620_v18 = vld [vmem:[#allocation11 + $0x130] sm:$0xff]  ;;  %v980_v41 = vld [vmem:[#allocation10 + $0x1d8] sm:$0xff]  ;;  %v985_v44 = vld [vmem:[#allocation10 + $0x200] sm:$0xff] }
  0xff   : > { %713 = vmatmul.mubr.f32.vlgmr.msra.gmra.mrb[0].mxu0 %v3651_v15  ;;  %v2614_v42 = vpack.c.bf16 %v980_v41, %v977_v39  ;;  %v984_v47 = vld [vmem:[#allocation10 + $0x1f8] sm:$0xff]  ;;  %v983_v49 = vld [vmem:[#allocation10 + $0x1f0] sm:$0xff]  ;;  %v986_v50 = vld [vmem:[#allocation10 + $0x208] sm:$0xff] }
 0x100   : > { %2525 = vmatpush1.bf16.msra.mxu0 %v2524_v16  ;;  %869 = vmatprep.mubr.f32.mxu0 %v3276_v1  ;;  %v2552_v16 = vpack.c.bf16 %v627_v12, %v624_v9  ;;  %v2617_v51 = vpack.c.bf16 %v986_v50, %v983_v49  ;;  %v991_v53 = vld [vmem:[#allocation10 + $0x230] sm:$0xff]  ;;  %v990_v56 = vld [vmem:[#allocation10 + $0x228] sm:$0xff]  ;;  %v989_v58 = vld [vmem:[#allocation10 + $0x220] sm:$0xff] }
 0x101   : > { %2527 = vmatprep.subr.bf16.mxu0 %v2526_v19  ;;  %2521 = vmatpush3.bf16.msra.mxu1 %v2520_v27  ;;  %v623_v19 = vld [vmem:[#allocation11 + $0x148] sm:$0xff]  ;;  %v992_v59 = vld [vmem:[#allocation10 + $0x238] sm:$0xff]  ;;  %v997_v62 = vld [vmem:[#allocation10 + $0x260] sm:$0xff] }
 0x102   : > { %2554 = vmatprep.subr.bf16.mxu1 %v3275_v0  ;;  %v2573_v21 = vpack.c.bf16 %v623_v19, %v620_v18  ;;  %v2620_v60 = vpack.c.bf16 %v992_v59, %v989_v58  ;;  %v996_v3 = vld [vmem:[#allocation10 + $0x258] sm:$0xff]  ;;  %v995_v5 = vld [vmem:[#allocation10 + $0x250] sm:$0xff]  ;;  %v998_v6 = vld [vmem:[#allocation10 + $0x268] sm:$0xff] }
 0x103   : > { %v2623_v7 = vpack.c.bf16 %v998_v6, %v995_v5  ;;  %v1003_v9 = vld [vmem:[#allocation10 + $0x290] sm:$0xff]  ;;  %v1002_v12 = vld [vmem:[#allocation10 + $0x288] sm:$0xff]  ;;  %v1001_v13 = vld [vmem:[#allocation10 + $0x280] sm:$0xff] }
 0x104   : > { %2529 = vmatpush1.bf16.msra.mxu0 %v2528_v25  ;;  %2289 = vmatmul.mubr.f32.vlgmr.msra.gmra.mrb[0].mxu1 %v3651_v15  ;;  %v970_v25 = vld [vmem:[#allocation10 + $0x188] sm:$0xff]  ;;  %v1004_v14 = vld [vmem:[#allocation10 + $0x298] sm:$0xff]  ;;  %v1009_v19 = vld [vmem:[#allocation10 + $0x2c0] sm:$0xff] }
 0x105   : > { %2531 = vmatprep.subr.bf16.mxu0 %v2530_v28  ;;  %2556 = vmatpush3.bf16.msra.mxu1 %v2555_v36  ;;  %v2578_v27 = vpack.c.bf16 %v973_v26, %v970_v25  ;;  %v969_v28 = vld [vmem:[#allocation10 + $0x180] sm:$0xff]  ;;  %v1006_v18 = vld [vmem:[#allocation10 + $0x2a8] sm:$0xff]  ;;  %v1008_v23 = vld [vmem:[#allocation10 + $0x2b8] sm:$0xff] }
 0x106   : > { %2557 = vmatprep.subr.bf16.mxu1 %v3275_v0  ;;  %2323 = vmatprep.mubr.msk.f32.mxu1 %vm3277_vm0, %v3276_v1  ;;  %v2580_v30 = vpack.c.bf16 %v972_v29, %v969_v28  ;;  %v2602_v22 = vpack.c.bf16 %v1009_v19, %v1006_v18  ;;  %v1010_v25 = vld [vmem:[#allocation10 + $0x2c8] sm:$0xff]  ;;  %v1012_v26 = vld [vmem:[#allocation10 + $0x2d8] sm:$0xff]  ;;  %v1011_v31 = vld [vmem:[#allocation10 + $0x2d0] sm:$0xff] }
 0x107   : > { %v1014_v32 = vld [vmem:[#allocation10 + $0x2e8] sm:$0xff]  ;;  %v1021_v19 = vld [vmem:[#allocation11 + $0x198] sm:$0xff] }
 0x108   : > { %2533 = vmatpush1.bf16.msra.mxu0 %v2532_v34  ;;  %v976_v34 = vld [vmem:[#allocation10 + $0x1b8] sm:$0xff] }
 0x109   : > { %2535 = vmatprep.subr.bf16.mxu0 %v2534_v37  ;;  %2559 = vmatpush3.bf16.msra.mxu1 %v2558_v45  ;;  %v2582_v36 = vpack.c.bf16 %v979_v35, %v976_v34  ;;  %v975_v37 = vld [vmem:[#allocation10 + $0x1b0] sm:$0xff]  ;;  %v1016_v34 = vld [vmem:[#allocation10 + $0x2f8] sm:$0xff]  ;;  %v1019_v35 = vld [vmem:[#allocation11 + $0x188] sm:$0xff] }
 0x10a   : > { %2560 = vmatprep.subr.bf16.mxu1 %v3275_v0  ;;  %v2584_v40 = vpack.c.bf16 %v978_v38, %v975_v37  ;;  %v2608_v37 = vpack.c.bf16 %v1014_v32, %v1011_v31  ;;  %v1027_v31 = vld [vmem:[#allocation11 + $0x1c8] sm:$0xff]  ;;  %v1026_v32 = vld [vmem:[#allocation11 + $0x1c0] sm:$0xff] }
 0x10c   : > { %2537 = vmatpush1.bf16.msra.mxu0 %v2536_v43  ;;  %v982_v43 = vld [vmem:[#allocation10 + $0x1e8] sm:$0xff] }
 0x10d   : > { %2539 = vmatprep.subr.bf16.mxu0 %v2538_v46  ;;  %2562 = vmatpush3.bf16.msra.mxu1 %v2561_v54  ;;  %v2586_v45 = vpack.c.bf16 %v985_v44, %v982_v43  ;;  %v981_v46 = vld [vmem:[#allocation10 + $0x1e0] sm:$0xff] }
 0x10e   : > { %2563 = vmatprep.subr.bf16.mxu1 %v3275_v0  ;;  %v2588_v48 = vpack.c.bf16 %v984_v47, %v981_v46  ;;  %v630_v46 = vld [vmem:[%s3903_s6] sm:$0x7] }
 0x110   : > { %2541 = vmatpush1.bf16.msra.mxu0 %v2540_v52  ;;  %v988_v52 = vld [vmem:[#allocation10 + $0x218] sm:$0xff] }
 0x111   : > { %2543 = vmatprep.subr.bf16.mxu0 %v2542_v55  ;;  %2565 = vmatpush3.bf16.msra.mxu1 %v2564_v63  ;;  %v2590_v54 = vpack.c.bf16 %v991_v53, %v988_v52  ;;  %v987_v55 = vld [vmem:[#allocation10 + $0x210] sm:$0xff] }
 0x112   : > { %2566 = vmatprep.subr.bf16.mxu1 %v3275_v0  ;;  %v2592_v57 = vpack.c.bf16 %v990_v56, %v987_v55 }
 0x114   : > { %2545 = vmatpush1.bf16.msra.mxu0 %v2544_v61  ;;  %v994_v61 = vld [vmem:[#allocation10 + $0x248] sm:$0xff] }
 0x115   : > { %2547 = vmatprep.subr.bf16.mxu0 %v2546_v2  ;;  %2568 = vmatpush3.bf16.msra.mxu1 %v2567_v10  ;;  %v2594_v63 = vpack.c.bf16 %v997_v62, %v994_v61  ;;  %v993_v2 = vld [vmem:[#allocation10 + $0x240] sm:$0xff]  ;;  %v999_v10 = vld [vmem:[#allocation10 + $0x270] sm:$0xff] }
 0x116   : > { %2569 = vmatprep.subr.bf16.mxu1 %v3275_v0  ;;  %v2596_v4 = vpack.c.bf16 %v996_v3, %v993_v2 }
 0x118   : > { %2549 = vmatpush1.bf16.msra.mxu0 %v2548_v8  ;;  %v1000_v8 = vld [vmem:[#allocation10 + $0x278] sm:$0xff] }
 0x119   : > { %2551 = vmatprep.subr.bf16.mxu0 %v2550_v11  ;;  %2571 = vmatpush3.bf16.msra.mxu1 %v2570_v17  ;;  %v2598_v11 = vpack.c.bf16 %v1003_v9, %v1000_v8  ;;  %v2626_v17 = vpack.c.bf16 %v1004_v14, %v1001_v13 }
 0x11a   : > { %2572 = vmatprep.subr.bf16.mxu1 %v3275_v0 }
 0x11c   : > { %2553 = vmatpush1.bf16.msra.mxu0 %v2552_v16  ;;  %v2600_v16 = vpack.c.bf16 %v1002_v12, %v999_v10 }
 0x11d   : > { %2574 = vmatpush3.bf16.msra.mxu1 %v2573_v21  ;;  %2579 = vmatprep.subr.bf16.mxu0 %v2578_v27  ;;  %v1005_v21 = vld [vmem:[#allocation10 + $0x2a0] sm:$0xff]  ;;  %v1015_v27 = vld [vmem:[#allocation10 + $0x2f0] sm:$0xff] }
 0x11e   : > { %2575 = vmatprep.subr.bf16.mxu1 %v3275_v0  ;;  %v2604_v28 = vpack.c.bf16 %v1008_v23, %v1005_v21  ;;  %v1020_v21 = vld [vmem:[#allocation11 + $0x190] sm:$0xff]  ;;  %v1025_v23 = vld [vmem:[#allocation11 + $0x1b8] sm:$0xff] }
 0x11f   : > { %870 = vmatmul.mubr.f32.vlgmr.msra.gmra.mrb[0].mxu0 %v3668_v20 }
 0x120   : > { %1150 = vmatprep.mubr.f32.mxu0 %v3276_v1  ;;  %2581 = vmatpush1.bf16.msra.mxu0 %v2580_v30  ;;  %v2606_v30 = vpack.c.bf16 %v1015_v27, %v1012_v26  ;;  %v1024_v27 = vld [vmem:[#allocation11 + $0x1b0] sm:$0xff] }
 0x121   : > { %2577 = vmatpush3.bf16.msra.mxu1 %v2576_v24  ;;  %2583 = vmatprep.subr.bf16.mxu0 %v2582_v36  ;;  %v1007_v24 = vld [vmem:[#allocation10 + $0x2b0] sm:$0xff]  ;;  %v1022_v36 = vld [vmem:[#allocation11 + $0x1a0] sm:$0xff] }
 0x122   : > { %2610 = vmatprep.subr.bf16.mxu1 %v3275_v0  ;;  %v2629_v29 = vpack.c.bf16 %v1010_v25, %v1007_v24  ;;  %v2634_v39 = vpack.c.bf16 %v1022_v36, %v1019_v35  ;;  %v1028_v24 = vld [vmem:[#allocation11 + $0x1d0] sm:$0xff]  ;;  %v2640_v35 = vpack.c.bf16 %v1027_v31, %v1024_v27  ;;  %v1030_v36 = vld [vmem:[#allocation11 + $0x1e0] sm:$0xff] }
 0x123   : > { %v1062_v27 = vld [vmem:[#allocation11 + $0x2e0] sm:$0xff] }
 0x124   : > { %2324 = vmatmul.mubr.f32.vlgmr.msra.gmra.mrb[2].mxu1 %v3668_v20  ;;  %2585 = vmatpush1.bf16.msra.mxu0 %v2584_v40 }
 0x125   : > { %2358 = vmatprep.mubr.msk.f32.mxu1 %vm3277_vm0, %v3276_v1  ;;  %2612 = vmatpush3.bf16.msra.mxu1 %v2611_v33  ;;  %v1013_v33 = vld [vmem:[#allocation10 + $0x2e0] sm:$0xff] }
 0x126   : > { %2613 = vmatprep.subr.bf16.mxu1 %v3275_v0  ;;  %2587 = vmatprep.subr.bf16.mxu0 %v2586_v45  ;;  %v2632_v38 = vpack.c.bf16 %v1016_v34, %v1013_v33  ;;  %v631_v45 = vld [vmem:[%s3904_s7] sm:$0x7]  ;;  %v1029_v33 = vld [vmem:[#allocation11 + $0x1d8] sm:$0xff]  ;;  %v1031_v34 = vld [vmem:[#allocation11 + $0x1e8] sm:$0xff] }
 0x128   : > { %2589 = vmatpush1.bf16.msra.mxu0 %v2588_v48 }
 0x129   : > { %2615 = vmatpush3.bf16.msra.mxu1 %v2614_v42  ;;  %2591 = vmatprep.subr.bf16.mxu0 %v2590_v54  ;;  %v633_v42 = vlaneseq }
 0x12a   : > { %2616 = vmatprep.subr.bf16.mxu1 %v3275_v0 }
 0x12b   : > { %v634_v43 = vshrl.u32 %v633_v42, 7  ;;  %v1040_v42 = vld [vmem:[#allocation11 + $0x230] sm:$0xff] }
 0x12c   : > { %2593 = vmatpush1.bf16.msra.mxu0 %v2592_v57 }
 0x12d   : > { %2618 = vmatpush3.bf16.msra.mxu1 %v2617_v51  ;;  %2595 = vmatprep.subr.bf16.mxu0 %v2594_v63  ;;  %v3686_v44 = vsub.s32 0, %v634_v43  ;;  %v3694_v47 = vsub.s32 1, %v634_v43  ;;  %v3700_v2 = vsub.s32 2, %v634_v43 }
 0x12e   : > { %2619 = vmatprep.subr.bf16.mxu1 %v3275_v0 }
 0x12f   : > { %v636_v48 = vrot.slane %v630_v46, %v3686_v44  ;;  %v793_v49 = vrot.slane %v631_v45, %v3686_v44  ;;  %v640_v50 = vrot.slane %v630_v46, %v3694_v47  ;;  %v797_v51 = vrot.slane %v631_v45, %v3694_v47 }
 0x130   : > { %2597 = vmatpush1.bf16.msra.mxu0 %v2596_v4  ;;  %v801_v3 = vrot.slane %v631_v45, %v3700_v2  ;;  %v644_v5 = vrot.slane %v630_v46, %v3700_v2  ;;  %v1036_v45 = vld [vmem:[#allocation11 + $0x210] sm:$0xff] }
 0x131   : > { %2621 = vmatpush3.bf16.msra.mxu1 %v2620_v60  ;;  %2599 = vmatprep.subr.bf16.mxu0 %v2598_v11  ;;  %v2802_v52 = vadd.f32 %v793_v49, %v636_v48  ;;  %v2804_v54 = vadd.f32 %v797_v51, %v640_v50  ;;  %v1039_v49 = vld [vmem:[#allocation11 + $0x228] sm:$0xff]  ;;  %v1038_v50 = vld [vmem:[#allocation11 + $0x220] sm:$0xff]  ;;  %v1041_v51 = vld [vmem:[#allocation11 + $0x238] sm:$0xff] }
 0x132   : > { %2622 = vmatprep.subr.bf16.mxu1 %v3275_v0 }
 0x134   : > { %2601 = vmatpush1.bf16.msra.mxu0 %v2600_v16  ;;  %v1018_v16 = vld [vmem:[#allocation11 + $0x180] sm:$0xff] }
 0x135   : > { %2624 = vmatpush3.bf16.msra.mxu1 %v2623_v7  ;;  %2603 = vmatprep.subr.bf16.mxu0 %v2602_v22  ;;  %v1023_v22 = vld [vmem:[#allocation11 + $0x1a8] sm:$0xff]  ;;  %v2636_v26 = vpack.c.bf16 %v1021_v19, %v1018_v16  ;;  %v1057_v16 = vld [vmem:[#allocation11 + $0x2b8] sm:$0xff] }
 0x136   : > { %2625 = vmatprep.subr.bf16.mxu1 %v3275_v0  ;;  %v1061_v19 = vld [vmem:[#allocation11 + $0x2d8] sm:$0xff] }
 0x138   : > { %2605 = vmatpush1.bf16.msra.mxu0 %v2604_v28  ;;  %v2667_v28 = vpack.c.bf16 %v1023_v22, %v1020_v21  ;;  %v1064_v21 = vld [vmem:[#allocation11 + $0x2f0] sm:$0xff] }
 0x139   : > { %2627 = vmatpush3.bf16.msra.mxu1 %v2626_v17  ;;  %2607 = vmatprep.subr.bf16.mxu0 %v2606_v30  ;;  %v2638_v30 = vpack.c.bf16 %v1028_v24, %v1025_v23  ;;  %v1060_v23 = vld [vmem:[#allocation11 + $0x2d0] sm:$0xff] }
 0x13a   : > { %2628 = vmatprep.subr.bf16.mxu1 %v3275_v0 }
 0x13c   : > { %2609 = vmatpush1.bf16.msra.mxu0 %v2608_v37 }
 0x13d   : > { %2630 = vmatpush3.bf16.msra.mxu1 %v2629_v29  ;;  %2635 = vmatprep.subr.bf16.mxu0 %v2634_v39  ;;  %v1032_v39 = vld [vmem:[#allocation11 + $0x1f0] sm:$0xff] }
 0x13e   : > { %2631 = vmatprep.subr.bf16.mxu1 %v3275_v0 }
 0x141   : > { %2633 = vmatpush3.bf16.msra.mxu1 %v2632_v38  ;;  %v1033_v38 = vld [vmem:[#allocation11 + $0x1f8] sm:$0xff] }
 0x142   : > { %2666 = vmatprep.subr.bf16.mxu1 %v3275_v0  ;;  %v2644_v43 = vpack.c.bf16 %v1033_v38, %v1030_v36  ;;  %v1410_v36 = vld [vmem:[#allocation10 + $0x318] sm:$0xff]  ;;  %v1412_v38 = vld [vmem:[#allocation10 + $0x328] sm:$0xff] }
 0x1d7   : > { %v785_v40 = vpop.f32.mrb[0].mxu1 }
 0x1d8   : > { %v2290_v41 = vpop.f32.mrb[1].mxu1  ;;  %v786_v9 = vadd.f32 %v785_v40, %v644_v5  ;;  %v1035_v40 = vld [vmem:[#allocation11 + $0x208] sm:$0xff] }
 0x1d9   : > { %v1037_v41 = vld [vmem:[#allocation11 + $0x218] sm:$0xff]  ;;  %v2673_v46 = vpack.c.bf16 %v1035_v40, %v1032_v39 }
 0x1da   : > { %v2646_v48 = vpack.c.bf16 %v1040_v42, %v1037_v41  ;;  %v1414_v40 = vld [vmem:[#allocation10 + $0x338] sm:$0xff]  ;;  %v1417_v41 = vld [vmem:[#allocation10 + $0x350] sm:$0xff] }
 0x1db   : > { %v2694_v42 = vpack.c.bf16 %v1417_v41, %v1414_v40  ;;  %v1449_v40 = vld [vmem:[#allocation10 + $0x450] sm:$0xff]  ;;  %v1452_v41 = vld [vmem:[#allocation10 + $0x468] sm:$0xff] }
 0x1f2   : > { %v871_v53 = vpop.f32.mrb[0].mxu0 }
 0x1f3   : > { %v2803_v55 = vadd.f32 %v2802_v52, %v871_v53  ;;  %v873_v56 = vpop.f32.mrb[1].mxu0  ;;  %v1043_v52 = vld [vmem:[#allocation11 + $0x248] sm:$0xff]  ;;  %v1046_v53 = vld [vmem:[#allocation11 + $0x260] sm:$0xff] }
 0x1f4   : > { %v2805_v58 = vadd.f32 %v2804_v54, %v873_v56  ;;  %v2648_v54 = vpack.c.bf16 %v1039_v49, %v1036_v45  ;;  %v2676_v56 = vpack.c.bf16 %v1041_v51, %v1038_v50  ;;  %v1416_v45 = vld [vmem:[#allocation10 + $0x348] sm:$0xff]  ;;  %v1418_v49 = vld [vmem:[#allocation10 + $0x358] sm:$0xff] }
 0x1f5   : > { %v2136_v57 = vmul.f32 -1.442695, %v2803_v55  ;;  %v1042_v55 = vld [vmem:[#allocation11 + $0x240] sm:$0xff]  ;;  %v1420_v51 = vld [vmem:[#allocation10 + $0x368] sm:$0xff] }
 0x1f6   : > { %v2137_v59 = vmul.f32 -1.442695, %v2805_v58  ;;  %v1045_v58 = vld [vmem:[#allocation11 + $0x258] sm:$0xff] }
 0x1f7   : > { %2917 = vpow2.f32 %v2136_v57  ;;  %v942_v60 = vpop.f32.mrb[2].mxu1  ;;  %v2650_v57 = vpack.c.bf16 %v1046_v53, %v1043_v52  ;;  %v1423_v52 = vld [vmem:[#allocation10 + $0x380] sm:$0xff] }
 0x1f8   : > { %v2325_v61 = vpop.f32.mrb[3].mxu1  ;;  %2919 = vpow2.f32 %v2137_v59  ;;  %v943_v7 = vadd.f32 %v942_v60, %v801_v3  ;;  %v1044_v59 = vld [vmem:[#allocation11 + $0x250] sm:$0xff]  ;;  %v1047_v60 = vld [vmem:[#allocation11 + $0x268] sm:$0xff]  ;;  %v2698_v53 = vpack.c.bf16 %v1423_v52, %v1420_v51 }
 0x1f9   : > { %v1049_v61 = vld [vmem:[#allocation11 + $0x278] sm:$0xff]  ;;  %v1048_v3 = vld [vmem:[#allocation11 + $0x270] sm:$0xff] }
 0x201   : > { %v2918_v62 = vpop.eup %2917 }
 0x202   : > { %v950_v63 = vadd.f32 1.0, %v2918_v62  ;;  %v2920_v4 = vpop.eup %2919  ;;  %v1052_v62 = vld [vmem:[#allocation11 + $0x290] sm:$0xff] }
 0x203   : > { %v957_v6 = vadd.f32 1.0, %v2920_v4  ;;  %v2679_v4 = vpack.c.bf16 %v1047_v60, %v1044_v59  ;;  %v2654_v5 = vpack.c.bf16 %v1052_v62, %v1049_v61  ;;  %v1426_v60 = vld [vmem:[#allocation10 + $0x398] sm:$0xff]  ;;  %v1429_v61 = vld [vmem:[#allocation10 + $0x3b0] sm:$0xff] }
 0x204   : > { %2921 = vrcp.f32 %v950_v63  ;;  %v2652_v63 = vpack.c.bf16 %v1045_v58, %v1042_v55  ;;  %v1422_v55 = vld [vmem:[#allocation10 + $0x378] sm:$0xff]  ;;  %v1424_v58 = vld [vmem:[#allocation10 + $0x388] sm:$0xff]  ;;  %v2702_v62 = vpack.c.bf16 %v1429_v61, %v1426_v60 }
 0x205   : > { %2923 = vrcp.f32 %v957_v6  ;;  %v1051_v6 = vld [vmem:[#allocation11 + $0x288] sm:$0xff] }
 0x20e   : > { %v2922_v8 = vpop.eup %2921 }
 0x20f   : > { %v960_v10 = vmul.f32 %v2922_v8, %v943_v7  ;;  %v2924_v12 = vpop.eup %2923  ;;  %v1050_v7 = vld [vmem:[#allocation11 + $0x280] sm:$0xff]  ;;  %v1053_v8 = vld [vmem:[#allocation11 + $0x298] sm:$0xff] }
 0x210   : > { %v963_v13 = vsub.f32 1.0, %v2924_v12  ;;  %v965_v18 = vmul.f32 %v2924_v12, %v3668_v20  ;;  %v1034_v20 = vld [vmem:[#allocation11 + $0x200] sm:$0xff] }
 0x211   : > { %v961_v11 = vadd.f32 %v960_v10, %v786_v9  ;;  %v2642_v37 = vpack.c.bf16 %v1034_v20, %v1031_v34  ;;  %v1055_v9 = vld [vmem:[#allocation11 + $0x2a8] sm:$0xff]  ;;  %v1058_v10 = vld [vmem:[#allocation11 + $0x2c0] sm:$0xff] }
 0x212   : > { %v1054_v12 = vld [vmem:[#allocation11 + $0x2a0] sm:$0xff] }
 0x213   : > { %2925 = vtanh.f32 %v961_v11  ;;  %v2656_v11 = vpack.c.bf16 %v1051_v6, %v1048_v3  ;;  %v2660_v22 = vpack.c.bf16 %v1057_v16, %v1054_v12  ;;  %v1411_v34 = vld [vmem:[#allocation10 + $0x320] sm:$0xff]  ;;  %v1428_v3 = vld [vmem:[#allocation10 + $0x3a8] sm:$0xff]  ;;  %v1430_v6 = vld [vmem:[#allocation10 + $0x3b8] sm:$0xff] }
 0x214   : > { %v1434_v12 = vld [vmem:[#allocation10 + $0x3d8] sm:$0xff]  ;;  %v1436_v16 = vld [vmem:[#allocation10 + $0x3e8] sm:$0xff] }
 0x21d   : > { %v2926_v14 = vpop.eup %2925 }
 0x21e   : > { %v964_v17 = vmul.f32 %v2926_v14, %v963_v13  ;;  %v2682_v13 = vpack.c.bf16 %v1053_v8, %v1050_v7  ;;  %v2658_v14 = vpack.c.bf16 %v1058_v10, %v1055_v9  ;;  %v1432_v8 = vld [vmem:[#allocation10 + $0x3c8] sm:$0xff]  ;;  %v1435_v9 = vld [vmem:[#allocation10 + $0x3e0] sm:$0xff] }
 0x21f   : > { %v2706_v10 = vpack.c.bf16 %v1435_v9, %v1432_v8 }
 0x220   : > { %v966_v25 = vadd.f32 %v965_v18, %v964_v17  ;;  %v1056_v17 = vld [vmem:[#allocation11 + $0x2b0] sm:$0xff]  ;;  %v1059_v18 = vld [vmem:[#allocation11 + $0x2c8] sm:$0xff] }
 0x221   : > { %v2685_v24 = vpack.c.bf16 %v1059_v18, %v1056_v17  ;;  %v1438_v18 = vld [vmem:[#allocation10 + $0x3f8] sm:$0xff] }
 0x222   : > { %v3706_v29 = vadd.f32 %v966_v25, %v3651_v15  ;;  %v2670_v15 = vpack.c.bf16 %v1029_v33, %v1026_v32  ;;  %v2662_v25 = vpack.c.bf16 %v1064_v21, %v1061_v19  ;;  %v3726_v32 = vld [vmem:[%s451_s0] sm:$0xff]  ;;  %v1441_v19 = vld [vmem:[#allocation10 + $0x410] sm:$0xff]  ;;  %s1884_s0 = sshll.u32 %s522_s30, 4  ;;  %s1885_s0 = int_to_ptr.vmem [resolvable:$true] %s1884_s0 }
 0x223   : > { %v1408_v33 = vld [vmem:[#allocation10 + $0x308] sm:$0xff]  ;;  %v1437_v21 = vld [vmem:[#allocation10 + $0x3f0] sm:$0xff]  ;;  %s3123_s19 = scalar_lea.vmem %s1885_s0, 128 }
 0x224   : > { %1151 = vmatmul.mubr.f32.vlgmr.msra.gmra.mrb[2].mxu0 %v3706_v29  ;;  %2359 = vmatmul.mubr.f32.vlgmr.msra.gmra.mrb[4].mxu1 %v3706_v29  ;;  %1844 = vst [vmem:[%s515_s22] sm:$0xff] %v3706_v29  ;;  %v2690_v20 = vpack.c.bf16 %v1411_v34, %v1408_v33  ;;  %v1446_v34 = vld [vmem:[#allocation10 + $0x438] sm:$0xff]  ;;  %p3124_p8 = scmp.ne.s32.totalorder %s1885_s0, %s3123_s19 }
 0x225   : > { %2637 = vmatpush1.bf16.msra.mxu0 %v2636_v26  ;;  %2668 = vmatpush3.bf16.msra.mxu1 %v2667_v28  ;;  %v1063_v26 = vld [vmem:[#allocation11 + $0x2e8] sm:$0xff]  ;;  %v1065_v28 = vld [vmem:[#allocation11 + $0x2f8] sm:$0xff] }
 0x226   : > { %2639 = vmatprep.subr.bf16.mxu0 %v2638_v30  ;;  %2669 = vmatprep.subr.bf16.mxu1 %v3275_v0  ;;  %v2664_v30 = vpack.c.bf16 %v1063_v26, %v1060_v23  ;;  %v2688_v31 = vpack.c.bf16 %v1065_v28, %v1062_v27  ;;  %v1440_v23 = vld [vmem:[#allocation10 + $0x408] sm:$0xff]  ;;  %p3125_p2 = pnand %p3124_p8, %p3974_p7 }
 0x227   : > { %1307 = vmatprep.mubr.f32.mxu0 %v3276_v1  ;;  %2393 = vmatprep.mubr.msk.f32.mxu1 %vm3277_vm0, %v3276_v1  ;;  %v2712_v26 = vpack.c.bf16 %v1440_v23, %v1437_v21  ;;  %v1444_v28 = vld [vmem:[#allocation10 + $0x428] sm:$0xff] }
 0x228   : > { %p3126_p5 = pneg %p3125_p2 }
 0x229   : > { %2641 = vmatpush1.bf16.msra.mxu0 %v2640_v35  ;;  %2671 = vmatpush3.bf16.msra.mxu1 %v2670_v15  ;;  %v1407_v35 = vld [vmem:[#allocation10 + $0x300] sm:$0xff] }
 0x22a   : > { %2643 = vmatprep.subr.bf16.mxu0 %v2642_v37  ;;  %2672 = vmatprep.subr.bf16.mxu1 %v3275_v0  ;;  %v2692_v15 = vpack.c.bf16 %v1410_v36, %v1407_v35  ;;  %v1409_v37 = vld [vmem:[#allocation10 + $0x310] sm:$0xff]  ;;  %v1448_v35 = vld [vmem:[#allocation10 + $0x448] sm:$0xff]  ;;  %v1450_v36 = vld [vmem:[#allocation10 + $0x458] sm:$0xff] }
 0x22b   : > { %v2723_v39 = vpack.c.bf16 %v1412_v38, %v1409_v37 }
 0x22d   : > { %2645 = vmatpush1.bf16.msra.mxu0 %v2644_v43  ;;  %2674 = vmatpush3.bf16.msra.mxu1 %v2673_v46  ;;  %v1413_v43 = vld [vmem:[#allocation10 + $0x330] sm:$0xff]  ;;  %v1415_v46 = vld [vmem:[#allocation10 + $0x340] sm:$0xff] }
 0x22e   : > { %2647 = vmatprep.subr.bf16.mxu0 %v2646_v48  ;;  %2675 = vmatprep.subr.bf16.mxu1 %v3275_v0  ;;  %v2696_v48 = vpack.c.bf16 %v1416_v45, %v1413_v43  ;;  %v2726_v50 = vpack.c.bf16 %v1418_v49, %v1415_v46  ;;  %v1454_v43 = vld [vmem:[#allocation10 + $0x478] sm:$0xff]  ;;  %v1457_v45 = vld [vmem:[#allocation11 + $0x308] sm:$0xff]  ;;  %v1460_v46 = vld [vmem:[#allocation11 + $0x320] sm:$0xff] }
 0x231   : > { %2649 = vmatpush1.bf16.msra.mxu0 %v2648_v54  ;;  %2677 = vmatpush3.bf16.msra.mxu1 %v2676_v56  ;;  %v1419_v54 = vld [vmem:[#allocation10 + $0x360] sm:$0xff] }
 0x232   : > { %2651 = vmatprep.subr.bf16.mxu0 %v2650_v57  ;;  %2678 = vmatprep.subr.bf16.mxu1 %v3275_v0  ;;  %v2700_v56 = vpack.c.bf16 %v1422_v55, %v1419_v54  ;;  %v1421_v57 = vld [vmem:[#allocation10 + $0x370] sm:$0xff]  ;;  %v2138_v54 = vld [vmem:[%s3903_s6 + $0x3] sm:$0x7] }
 0x233   : > { %v2729_v59 = vpack.c.bf16 %v1424_v58, %v1421_v57  ;;  %v1074_v55 = vrot.slane %v2138_v54, %v3686_v44  ;;  %v1078_v57 = vrot.slane %v2138_v54, %v3694_v47 }
 0x235   : > { %2653 = vmatpush1.bf16.msra.mxu0 %v2652_v63  ;;  %2680 = vmatpush3.bf16.msra.mxu1 %v2679_v4  ;;  %v1425_v63 = vld [vmem:[#allocation10 + $0x390] sm:$0xff] }
 0x236   : > { %2655 = vmatprep.subr.bf16.mxu0 %v2654_v5  ;;  %2681 = vmatprep.subr.bf16.mxu1 %v3275_v0  ;;  %v2704_v4 = vpack.c.bf16 %v1428_v3, %v1425_v63  ;;  %v1427_v5 = vld [vmem:[#allocation10 + $0x3a0] sm:$0xff] }
 0x237   : > { %v2732_v7 = vpack.c.bf16 %v1430_v6, %v1427_v5 }
 0x239   : > { %2657 = vmatpush1.bf16.msra.mxu0 %v2656_v11  ;;  %2683 = vmatpush3.bf16.msra.mxu1 %v2682_v13  ;;  %v1431_v11 = vld [vmem:[#allocation10 + $0x3c0] sm:$0xff] }
 0x23a   : > { %2659 = vmatprep.subr.bf16.mxu0 %v2658_v14  ;;  %2684 = vmatprep.subr.bf16.mxu1 %v3275_v0  ;;  %v2708_v13 = vpack.c.bf16 %v1434_v12, %v1431_v11  ;;  %v1433_v14 = vld [vmem:[#allocation10 + $0x3d0] sm:$0xff]  ;;  %v1082_v12 = vrot.slane %v2138_v54, %v3700_v2 }
 0x23b   : > { %v2735_v17 = vpack.c.bf16 %v1436_v16, %v1433_v14 }
 0x23d   : > { %2661 = vmatpush1.bf16.msra.mxu0 %v2660_v22  ;;  %2686 = vmatpush3.bf16.msra.mxu1 %v2685_v24  ;;  %v2710_v22 = vpack.c.bf16 %v1441_v19, %v1438_v18  ;;  %v1439_v24 = vld [vmem:[#allocation10 + $0x400] sm:$0xff] }
 0x23e   : > { %2663 = vmatprep.subr.bf16.mxu0 %v2662_v25  ;;  %2687 = vmatprep.subr.bf16.mxu1 %v3275_v0  ;;  %v1442_v25 = vld [vmem:[#allocation10 + $0x418] sm:$0xff] }
 0x23f   : > { %v2738_v27 = vpack.c.bf16 %v1442_v25, %v1439_v24  ;;  %v1456_v24 = vld [vmem:[#allocation11 + $0x300] sm:$0xff] }
 0x241   : > { %2665 = vmatpush1.bf16.msra.mxu0 %v2664_v30  ;;  %2689 = vmatpush3.bf16.msra.mxu1 %v2688_v31  ;;  %v1447_v30 = vld [vmem:[#allocation10 + $0x440] sm:$0xff] }
 0x242   : > { %2722 = vmatprep.subr.bf16.mxu1 %v3275_v0  ;;  %2691 = vmatprep.subr.bf16.mxu0 %v2690_v20  ;;  %v1443_v31 = vld [vmem:[#allocation10 + $0x420] sm:$0xff]  ;;  %v2714_v33 = vpack.c.bf16 %v1447_v30, %v1444_v28  ;;  %v1445_v20 = vld [vmem:[#allocation10 + $0x430] sm:$0xff]  ;;  %v1461_v30 = vld [vmem:[#allocation11 + $0x328] sm:$0xff] }
 0x243   : > { %v2716_v37 = vpack.c.bf16 %v1446_v34, %v1443_v31  ;;  %v2741_v38 = vpack.c.bf16 %v1448_v35, %v1445_v20  ;;  %v1458_v28 = vld [vmem:[#allocation11 + $0x310] sm:$0xff]  ;;  %v1463_v31 = vld [vmem:[#allocation11 + $0x338] sm:$0xff] }
 0x244   : > { %1308 = vmatmul.mubr.f32.vlgmr.msra.gmra.mrb[2].mxu0 %v3726_v32  ;;  %2394 = vmatmul.mubr.f32.vlgmr.msra.gmra.mrb[6].mxu1 %v3726_v32  ;;  %v1462_v35 = vld [vmem:[#allocation11 + $0x330] sm:$0xff] }
 0x245   : > { %1588 = vmatprep.mubr.f32.mxu0 %v3276_v1  ;;  %2428 = vmatprep.mubr.msk.f32.mxu1 %vm3277_vm0, %v3276_v1 }
 0x246   : > { %2693 = vmatpush1.bf16.msra.mxu0 %v2692_v15  ;;  %2724 = vmatpush3.bf16.msra.mxu1 %v2723_v39  ;;  %v1453_v15 = vld [vmem:[#allocation10 + $0x470] sm:$0xff] }
 0x247   : > { %2725 = vmatprep.subr.bf16.mxu1 %v3275_v0  ;;  %2695 = vmatprep.subr.bf16.mxu0 %v2694_v42  ;;  %v2718_v39 = vpack.c.bf16 %v1453_v15, %v1450_v36  ;;  %v1451_v42 = vld [vmem:[#allocation10 + $0x460] sm:$0xff]  ;;  %v2779_v36 = vpack.c.bf16 %v1461_v30, %v1458_v28  ;;  %v1498_v30 = vld [vmem:[#allocation11 + $0x450] sm:$0xff] }
 0x248   : > { %v2744_v49 = vpack.c.bf16 %v1454_v43, %v1451_v42  ;;  %v1468_v43 = vld [vmem:[#allocation11 + $0x360] sm:$0xff] }
 0x24a   : > { %2697 = vmatpush1.bf16.msra.mxu0 %v2696_v48  ;;  %2727 = vmatpush3.bf16.msra.mxu1 %v2726_v50  ;;  %v2720_v48 = vpack.c.bf16 %v1452_v41, %v1449_v40  ;;  %v2746_v50 = vpack.c.bf16 %v1460_v46, %v1457_v45  ;;  %v1467_v40 = vld [vmem:[#allocation11 + $0x358] sm:$0xff]  ;;  %v1469_v41 = vld [vmem:[#allocation11 + $0x368] sm:$0xff] }
 0x24b   : > { %2728 = vmatprep.subr.bf16.mxu1 %v3275_v0  ;;  %2699 = vmatprep.subr.bf16.mxu0 %v2698_v53  ;;  %v2139_v53 = vld [vmem:[%s3904_s7 + $0x3] sm:$0x7]  ;;  %v1471_v46 = vld [vmem:[#allocation11 + $0x378] sm:$0xff] }
 0x24c   : > { %v1235_v58 = vrot.slane %v2139_v53, %v3694_v47 }
 0x24e   : > { %2701 = vmatpush1.bf16.msra.mxu0 %v2700_v56  ;;  %2730 = vmatpush3.bf16.msra.mxu1 %v2729_v59  ;;  %v1231_v56 = vrot.slane %v2139_v53, %v3686_v44  ;;  %v2808_v61 = vadd.f32 %v1235_v58, %v1078_v57  ;;  %v1476_v57 = vld [vmem:[#allocation11 + $0x3a0] sm:$0xff]  ;;  %v1479_v58 = vld [vmem:[#allocation11 + $0x3b8] sm:$0xff] }
 0x24f   : > { %2731 = vmatprep.subr.bf16.mxu1 %v3275_v0  ;;  %2703 = vmatprep.subr.bf16.mxu0 %v2702_v62 }
 0x250   : > { %v2806_v59 = vadd.f32 %v1231_v56, %v1074_v55  ;;  %v1477_v56 = vld [vmem:[#allocation11 + $0x3a8] sm:$0xff] }
 0x252   : > { %2705 = vmatpush1.bf16.msra.mxu0 %v2704_v4  ;;  %2733 = vmatpush3.bf16.msra.mxu1 %v2732_v7 }
 0x253   : > { %2734 = vmatprep.subr.bf16.mxu1 %v3275_v0  ;;  %2707 = vmatprep.subr.bf16.mxu0 %v2706_v10  ;;  %v1239_v10 = vrot.slane %v2139_v53, %v3700_v2  ;;  %v1474_v53 = vld [vmem:[#allocation11 + $0x390] sm:$0xff] }
 0x256   : > { %2709 = vmatpush1.bf16.msra.mxu0 %v2708_v13  ;;  %2736 = vmatpush3.bf16.msra.mxu1 %v2735_v17 }
 0x257   : > { %2711 = vmatprep.subr.bf16.mxu0 %v2710_v22  ;;  %2737 = vmatprep.subr.bf16.mxu1 %v3275_v0 }
 0x25a   : > { %2713 = vmatpush1.bf16.msra.mxu0 %v2712_v26  ;;  %2739 = vmatpush3.bf16.msra.mxu1 %v2738_v27  ;;  %v1459_v27 = vld [vmem:[#allocation11 + $0x318] sm:$0xff] }
 0x25b   : > { %2715 = vmatprep.subr.bf16.mxu0 %v2714_v33  ;;  %2740 = vmatprep.subr.bf16.mxu1 %v3275_v0  ;;  %v1466_v33 = vld [vmem:[#allocation11 + $0x350] sm:$0xff]  ;;  %v2748_v20 = vpack.c.bf16 %v1459_v27, %v1456_v24 }
 0x25c   : > { %v1494_v24 = vld [vmem:[#allocation11 + $0x430] sm:$0xff] }
 0x25d   : > { %v1502_v27 = vld [vmem:[#allocation11 + $0x470] sm:$0xff] }
 0x25e   : > { %2717 = vmatpush1.bf16.msra.mxu0 %v2716_v37  ;;  %2742 = vmatpush3.bf16.msra.mxu1 %v2741_v38  ;;  %v2750_v37 = vpack.c.bf16 %v1466_v33, %v1463_v31  ;;  %v1465_v38 = vld [vmem:[#allocation11 + $0x348] sm:$0xff] }
 0x25f   : > { %2719 = vmatprep.subr.bf16.mxu0 %v2718_v39  ;;  %2743 = vmatprep.subr.bf16.mxu1 %v3275_v0  ;;  %v1464_v39 = vld [vmem:[#allocation11 + $0x340] sm:$0xff]  ;;  %v2752_v42 = vpack.c.bf16 %v1465_v38, %v1462_v35  ;;  %v1503_v35 = vld [vmem:[#allocation11 + $0x478] sm:$0xff] }
 0x260   : > { %v3776_v38 = vld [vmem:[%s460_s27] sm:$0xff]  ;;  %s3278_s27 = smov [#allocation14]  }
 0x261   : > { %s3127_s12 = sshll.u32 %s3278_s27, 4  ;;  %s3128_s12 = int_to_ptr.vmem [resolvable:$false] %s3127_s12 }
 0x262   : > { %2721 = vmatpush1.bf16.msra.mxu0 %v2720_v48  ;;  %2745 = vmatpush3.bf16.msra.mxu1 %v2744_v49  ;;  %v1470_v48 = vld [vmem:[#allocation11 + $0x370] sm:$0xff]  ;;  %v1473_v49 = vld [vmem:[#allocation11 + $0x388] sm:$0xff]  ;;  %s3129_s17 = scalar_lea.vmem %s3128_s12, 256  ;;  %p3130_p13 = scmp.lt.s32.totalorder %s1885_s0, %s3128_s12 }
 0x263   : > { %2747 = vmatprep.subr.bf16.mxu0 %v2746_v50  ;;  %2778 = vmatprep.subr.bf16.mxu1 %v3275_v0  ;;  %v1475_v50 = vld [vmem:[#allocation11 + $0x398] sm:$0xff]  ;;  %v2785_v54 = vpack.c.bf16 %v1473_v49, %v1470_v48  ;;  %p3131_p3 = scmp.lt.s32.totalorder %s3129_s17, %s3123_s19 }
 0x265   : > { %p3132_p6 = por %p3131_p3, %p3130_p13 }
 0x267   : > { %p3133_p10 = pnand %p3132_p6, %p3126_p5 }
 0x2f7   : > { %v1223_v51 = vpop.f32.mrb[4].mxu1 }
 0x2f8   : > { %v2360_v52 = vpop.f32.mrb[5].mxu1  ;;  %v1224_v17 = vadd.f32 %v1223_v51, %v1082_v12  ;;  %v1478_v51 = vld [vmem:[#allocation11 + $0x3b0] sm:$0xff]  ;;  %v1489_v12 = vld [vmem:[#allocation11 + $0x408] sm:$0xff] }
 0x2f9   : > { %v2756_v52 = vpack.c.bf16 %v1471_v46, %v1468_v43  ;;  %v2758_v55 = vpack.c.bf16 %v1478_v51, %v1475_v50 }
 0x317   : > { %v1309_v60 = vpop.f32.mrb[2].mxu0  ;;  %v1380_v62 = vpop.f32.mrb[6].mxu1 }
 0x318   : > { %v2807_v63 = vadd.f32 %v2806_v59, %v1309_v60  ;;  %v1311_v3 = vpop.f32.mrb[3].mxu0  ;;  %v2395_v4 = vpop.f32.mrb[7].mxu1  ;;  %v1381_v14 = vadd.f32 %v1380_v62, %v1239_v10  ;;  %v1481_v59 = vld [vmem:[#allocation11 + $0x3c8] sm:$0xff]  ;;  %v1484_v60 = vld [vmem:[#allocation11 + $0x3e0] sm:$0xff] }
 0x319   : > { %v2809_v6 = vadd.f32 %v2808_v61, %v1311_v3  ;;  %v2760_v61 = vpack.c.bf16 %v1477_v56, %v1474_v53  ;;  %v1480_v62 = vld [vmem:[#allocation11 + $0x3c0] sm:$0xff]  ;;  %v1483_v3 = vld [vmem:[#allocation11 + $0x3d8] sm:$0xff]  ;;  %v1482_v4 = vld [vmem:[#allocation11 + $0x3d0] sm:$0xff] }
 0x31a   : > { %v2140_v5 = vmul.f32 -1.442695, %v2807_v63  ;;  %v2788_v63 = vpack.c.bf16 %v1479_v58, %v1476_v57 }
 0x31b   : > { %v2141_v7 = vmul.f32 -1.442695, %v2809_v6  ;;  %v1487_v6 = vld [vmem:[#allocation11 + $0x3f8] sm:$0xff] }
 0x31c   : > { %2927 = vpow2.f32 %v2140_v5  ;;  %v1485_v5 = vld [vmem:[#allocation11 + $0x3e8] sm:$0xff] }
 0x31d   : > { %2929 = vpow2.f32 %v2141_v7  ;;  %v1490_v7 = vld [vmem:[#allocation11 + $0x410] sm:$0xff]  ;;  %v2791_v10 = vpack.c.bf16 %v1485_v5, %v1482_v4 }
 0x326   : > { %v2928_v8 = vpop.eup %2927 }
 0x327   : > { %v1388_v9 = vadd.f32 1.0, %v2928_v8  ;;  %v2930_v11 = vpop.eup %2929  ;;  %v2764_v8 = vpack.c.bf16 %v1483_v3, %v1480_v62 }
 0x328   : > { %v1395_v13 = vadd.f32 1.0, %v2930_v11  ;;  %v2766_v11 = vpack.c.bf16 %v1490_v7, %v1487_v6 }
 0x329   : > { %2931 = vrcp.f32 %v1388_v9  ;;  %v1486_v9 = vld [vmem:[#allocation11 + $0x3f0] sm:$0xff] }
 0x32a   : > { %2933 = vrcp.f32 %v1395_v13  ;;  %v1488_v13 = vld [vmem:[#allocation11 + $0x400] sm:$0xff] }
 0x333   : > { %v2932_v16 = vpop.eup %2931 }
 0x334   : > { %v1398_v18 = vmul.f32 %v2932_v16, %v1381_v14  ;;  %v2934_v21 = vpop.eup %2933  ;;  %v1491_v14 = vld [vmem:[#allocation11 + $0x418] sm:$0xff]  ;;  %v1493_v16 = vld [vmem:[#allocation11 + $0x428] sm:$0xff] }
 0x335   : > { %v1401_v22 = vsub.f32 1.0, %v2934_v21  ;;  %v1403_v26 = vmul.f32 %v2934_v21, %v3726_v32  ;;  %v1472_v32 = vld [vmem:[#allocation11 + $0x380] sm:$0xff]  ;;  %v2794_v21 = vpack.c.bf16 %v1491_v14, %v1488_v13 }
 0x336   : > { %v1399_v19 = vadd.f32 %v1398_v18, %v1224_v17  ;;  %v2754_v45 = vpack.c.bf16 %v1472_v32, %v1469_v41  ;;  %v1496_v17 = vld [vmem:[#allocation11 + $0x440] sm:$0xff]  ;;  %v2768_v18 = vpack.c.bf16 %v1489_v12, %v1486_v9 }
 0x338   : > { %2935 = vtanh.f32 %v1399_v19  ;;  %v1492_v19 = vld [vmem:[#allocation11 + $0x420] sm:$0xff] }
 0x342   : > { %v2936_v23 = vpop.eup %2935 }
 0x343   : > { %v1402_v25 = vmul.f32 %v2936_v23, %v1401_v22  ;;  %v2770_v22 = vpack.c.bf16 %v1496_v17, %v1493_v16  ;;  %v1495_v23 = vld [vmem:[#allocation11 + $0x438] sm:$0xff] }
 0x344   : > { %v2772_v28 = vpack.c.bf16 %v1495_v23, %v1492_v19 }
 0x345   : > { %v1404_v34 = vadd.f32 %v1403_v26, %v1402_v25  ;;  %v1497_v25 = vld [vmem:[#allocation11 + $0x448] sm:$0xff]  ;;  %v1499_v26 = vld [vmem:[#allocation11 + $0x458] sm:$0xff] }
 0x346   : > { %v2797_v31 = vpack.c.bf16 %v1497_v25, %v1494_v24  ;;  %v2774_v33 = vpack.c.bf16 %v1502_v27, %v1499_v26 }
 0x347   : > { %v3756_v15 = vadd.f32 %v1404_v34, %v3706_v29  ;;  %v2782_v29 = vpack.c.bf16 %v1467_v40, %v1464_v39  ;;  %v1501_v34 = vld [vmem:[#allocation11 + $0x468] sm:$0xff] }
 0x349   : > { %1589 = vmatmul.mubr.f32.vlgmr.msra.gmra.mrb[4].mxu0 %v3756_v15  ;;  %2429 = vmatmul.mubr.f32.vlgmr.msra.gmra.mrb[8].mxu1 %v3756_v15  ;;  %1845 = vst [vmem:[%s522_s30] sm:$0xff] %v3756_v15 }
 0x34a   : > { %2749 = vmatpush1.bf16.msra.mxu0 %v2748_v20  ;;  %2780 = vmatpush3.bf16.msra.mxu1 %v2779_v36  ;;  %v1500_v20 = vld [vmem:[#allocation11 + $0x460] sm:$0xff]  ;;  %v2776_v36 = vpack.c.bf16 %v1501_v34, %v1498_v30 }
 0x34b   : > { %2751 = vmatprep.subr.bf16.mxu0 %v2750_v37  ;;  %2781 = vmatprep.subr.bf16.mxu1 %v3275_v0  ;;  %v2800_v37 = vpack.c.bf16 %v1503_v35, %v1500_v20 }
 0x34c   : > { %1745 = vmatprep.mubr.f32.mxu0 %v3276_v1  ;;  %2463 = vmatprep.mubr.msk.f32.mxu1 %vm3277_vm0, %v3276_v1  ;;  %v2762_v1 = vpack.c.bf16 %v1484_v60, %v1481_v59 }
 0x34e   : > { %2753 = vmatpush1.bf16.msra.mxu0 %v2752_v42  ;;  %2783 = vmatpush3.bf16.msra.mxu1 %v2782_v29 }
 0x34f   : > { %2755 = vmatprep.subr.bf16.mxu0 %v2754_v45  ;;  %2784 = vmatprep.subr.bf16.mxu1 %v3275_v0 }
 0x352   : > { %2757 = vmatpush1.bf16.msra.mxu0 %v2756_v52  ;;  %2786 = vmatpush3.bf16.msra.mxu1 %v2785_v54 }
 0x353   : > { %2759 = vmatprep.subr.bf16.mxu0 %v2758_v55  ;;  %2787 = vmatprep.subr.bf16.mxu1 %v3275_v0 }
 0x356   : > { %2761 = vmatpush1.bf16.msra.mxu0 %v2760_v61  ;;  %2789 = vmatpush3.bf16.msra.mxu1 %v2788_v63 }
 0x357   : > { %2763 = vmatprep.subr.bf16.mxu0 %v2762_v1  ;;  %2790 = vmatprep.subr.bf16.mxu1 %v3275_v0 }
 0x35a   : > { %2765 = vmatpush1.bf16.msra.mxu0 %v2764_v8  ;;  %2792 = vmatpush3.bf16.msra.mxu1 %v2791_v10 }
 0x35b   : > { %2767 = vmatprep.subr.bf16.mxu0 %v2766_v11  ;;  %2793 = vmatprep.subr.bf16.mxu1 %v3275_v0 }
 0x35e   : > { %2769 = vmatpush1.bf16.msra.mxu0 %v2768_v18  ;;  %2795 = vmatpush3.bf16.msra.mxu1 %v2794_v21 }
 0x35f   : > { %2771 = vmatprep.subr.bf16.mxu0 %v2770_v22  ;;  %2796 = vmatprep.subr.bf16.mxu1 %v3275_v0 }
 0x362   : > { %2773 = vmatpush1.bf16.msra.mxu0 %v2772_v28  ;;  %2798 = vmatpush3.bf16.msra.mxu1 %v2797_v31 }
 0x363   : > { %2775 = vmatprep.subr.bf16.mxu0 %v2774_v33  ;;  %2799 = vmatprep.subr.bf16.mxu1 %v3275_v0 }
 0x366   : > { %2777 = vmatpush1.bf16.msra.mxu0 %v2776_v36  ;;  %2801 = vmatpush3.bf16.msra.mxu1 %v2800_v37 }
 0x369   : > { %1746 = vmatmul.mubr.f32.vlgmr.msra.gmra.mrb[4].mxu0 %v3776_v38  ;;  %2464 = vmatmul.mubr.f32.vlgmr.msra.gmra.mrb[10].mxu1 %v3776_v38 }
 0x36a   : > { %3136 = shalt.err (!%p3133_p10)
}
 0x36b   : > { %s3137_s9 = scalar_lea.hbm %s3787_s8, 128  ;;  %s3141_s10 = scalar_lea.hbm %s3973_s23, 256 }
 0x36c   : > { %p3138_p1 = scmp.ne.s32.totalorder %s3787_s8, %s3137_s9  ;;  %p3142_p4 = scmp.lt.u32.totalorder %s3787_s8, %s3973_s23 }
 0x36d   : > { %p3143_p9 = scmp.lt.u32.totalorder %s3141_s10, %s3137_s9  ;;  %p3145_p8 = scmp.lt.u32.totalorder %s3137_s9, %s3787_s8 }
 0x36e   : > { %p3139_p0 = pnand %p3138_p1, %p3974_p7 }
 0x36f   : > { %p3144_p11 = por %p3143_p9, %p3142_p4 }
 0x370   : > { %p3140_p12 = pneg %p3139_p0 }
 0x371   : > { %p3146_p2 = por %p3145_p8, %p3144_p11 }
 0x373   : > { %p3147_p5 = pnand %p3146_p2, %p3140_p12 }
 0x375   : > { %3150 = shalt.err (!%p3147_p5)
}
 0x376   : > { %2837 = dma.vmem_to_hbm [thread:$0]  (%p3974_p7), %s1885_s0, 128, %s3787_s8, %s1853_s18  }
 0x377   : > { %s3975_s13 = sld [smem:[#allocation32_spill]]  ;;  %s1871_s12 = sshll.u32 %s515_s22, 4  ;;  %s1872_s12 = int_to_ptr.vmem [resolvable:$true] %s1871_s12 }
 0x378   : > { %s1848_s17 = scalar_lea.sflag [#allocation4], %s3605_s20  ;;  %s3151_s9 = scalar_lea.vmem %s1872_s12, 128 }
 0x379   : > { %p3152_p13 = scmp.ne.s32.totalorder %s1872_s12, %s3151_s9  ;;  %s3279_s26 = smov [#allocation13]  }
 0x37a   : > { %s3155_s24 = sshll.u32 %s3279_s26, 4  ;;  %s3156_s24 = int_to_ptr.vmem [resolvable:$false] %s3155_s24 }
 0x37b   : > { %p3153_p3 = pnand %p3152_p13, %p3974_p7  ;;  %s3157_s10 = scalar_lea.vmem %s3156_s24, 256 }
 0x37c   : > { %p3158_p10 = scmp.lt.s32.totalorder %s1872_s12, %s3156_s24  ;;  %p3159_p1 = scmp.lt.s32.totalorder %s3157_s10, %s3151_s9 }
 0x37d   : > { %s3976_s19 = smov %s3975_s13  ;;  %s3815_s27 = scalar_lea.hbm %s3975_s13, %s3781_s29 }
 0x37e   : > { %p3154_p6 = pneg %p3153_p3  ;;  %p3160_p0 = por %p3159_p1, %p3158_p10 }
 0x380   : > { %p3161_p12 = pnand %p3160_p0, %p3154_p6 }
 0x382   : > { %3164 = shalt.err (!%p3161_p12)
}
 0x383   : > { %s3165_s20 = scalar_lea.hbm %s3815_s27, 128  ;;  %s3169_s0 = scalar_lea.hbm %s3976_s19, 256 }
 0x384   : > { %p3166_p4 = scmp.ne.s32.totalorder %s3815_s27, %s3165_s20  ;;  %p3170_p8 = scmp.lt.u32.totalorder %s3815_s27, %s3976_s19 }
 0x385   : > { %p3171_p2 = scmp.lt.u32.totalorder %s3169_s0, %s3165_s20  ;;  %p3173_p13 = scmp.lt.u32.totalorder %s3165_s20, %s3815_s27 }
 0x386   : > { %p3167_p9 = pnand %p3166_p4, %p3974_p7 }
 0x387   : > { %p3172_p5 = por %p3171_p2, %p3170_p8 }
 0x388   : > { %p3168_p11 = pneg %p3167_p9 }
 0x389   : > { %p3174_p3 = por %p3173_p13, %p3172_p5 }
 0x38b   : > { %p3175_p6 = pnand %p3174_p3, %p3168_p11 }
 0x38d   : > { %3178 = shalt.err (!%p3175_p6)
}
 0x38e   : > { %2836 = dma.vmem_to_hbm [thread:$0]  (%p3974_p7), %s1872_s12, 128, %s3815_s27, %s1848_s17   ;;  %v2143_v40 = vld [vmem:[%s3904_s7 + $0x6] sm:$0x7] }
 0x38f   : > { %v2142_v41 = vld [vmem:[%s3903_s6 + $0x6] sm:$0x7]  ;;  %v1669_v42 = vrot.slane %v2143_v40, %v3686_v44  ;;  %v1673_v29 = vrot.slane %v2143_v40, %v3694_v47  ;;  %s529_s27 = scalar_lea.vmem [#allocation16], %s3608_s25  ;;  %s3977_s24 = sld [smem:[#allocation34_spill]] }
 0x390   : > { %v1512_v32 = vrot.slane %v2142_v41, %v3686_v44  ;;  %v1516_v43 = vrot.slane %v2142_v41, %v3694_v47  ;;  %v1677_v44 = vrot.slane %v2143_v40, %v3700_v2  ;;  %v1520_v47 = vrot.slane %v2142_v41, %v3700_v2  ;;  %s1897_s12 = sshll.u32 %s529_s27, 4  ;;  %s3280_s22 = smov [#allocation16]   ;;  %s1898_s12 = int_to_ptr.vmem [resolvable:$true] %s1897_s12 }
 0x391   : > { %s3179_s20 = scalar_lea.vmem %s1898_s12, 128  ;;  %s3183_s8 = sshll.u32 %s3280_s22, 4  ;;  %s3184_s8 = int_to_ptr.vmem [resolvable:$false] %s3183_s8 }
 0x392   : > { %v2810_v45 = vadd.f32 %v1669_v42, %v1512_v32  ;;  %v2812_v48 = vadd.f32 %v1673_v29, %v1516_v43  ;;  %p3180_p10 = scmp.ne.s32.totalorder %s1898_s12, %s3179_s20  ;;  %s3185_s25 = scalar_lea.vmem %s3184_s8, 256 }
 0x393   : > { %p3186_p12 = scmp.lt.s32.totalorder %s1898_s12, %s3184_s8  ;;  %p3187_p4 = scmp.lt.s32.totalorder %s3185_s25, %s3179_s20 }
 0x394   : > { %p3181_p1 = pnand %p3180_p10, %p3974_p7 }
 0x395   : > { %s3856_s10 = scalar_lea.hbm %s3977_s24, %s3781_s29  ;;  %p3188_p9 = por %p3187_p4, %p3186_p12 }
 0x396   : > { %p3182_p0 = pneg %p3181_p1 }
 0x398   : > { %p3189_p11 = pnand %p3188_p9, %p3182_p0 }
 0x41c   : > { %v1661_v0 = vpop.f32.mrb[8].mxu1 }
 0x41d   : > { %v2430_v39 = vpop.f32.mrb[9].mxu1  ;;  %v1662_v62 = vadd.f32 %v1661_v0, %v1520_v47 }
 0x43c   : > { %v1747_v46 = vpop.f32.mrb[4].mxu0  ;;  %v1818_v49 = vpop.f32.mrb[10].mxu1 }
 0x43d   : > { %v2811_v50 = vadd.f32 %v2810_v45, %v1747_v46  ;;  %v1749_v51 = vpop.f32.mrb[5].mxu0  ;;  %v2465_v52 = vpop.f32.mrb[11].mxu1  ;;  %v1819_v60 = vadd.f32 %v1818_v49, %v1677_v44 }
 0x43e   : > { %v2813_v54 = vadd.f32 %v2812_v48, %v1749_v51 }
 0x43f   : > { %v2144_v53 = vmul.f32 -1.442695, %v2811_v50 }
 0x440   : > { %v2145_v55 = vmul.f32 -1.442695, %v2813_v54 }
 0x441   : > { %2937 = vpow2.f32 %v2144_v53 }
 0x442   : > { %2939 = vpow2.f32 %v2145_v55 }
 0x44b   : > { %v2938_v56 = vpop.eup %2937 }
 0x44c   : > { %v1826_v57 = vadd.f32 1.0, %v2938_v56  ;;  %v2940_v58 = vpop.eup %2939 }
 0x44d   : > { %v1833_v59 = vadd.f32 1.0, %v2940_v58 }
 0x44e   : > { %2941 = vrcp.f32 %v1826_v57 }
 0x44f   : > { %2943 = vrcp.f32 %v1833_v59 }
 0x458   : > { %v2942_v61 = vpop.eup %2941 }
 0x459   : > { %v1836_v63 = vmul.f32 %v2942_v61, %v1819_v60  ;;  %v2944_v3 = vpop.eup %2943 }
 0x45a   : > { %v1839_v4 = vsub.f32 1.0, %v2944_v3  ;;  %v1841_v6 = vmul.f32 %v2944_v3, %v3776_v38 }
 0x45b   : > { %v1837_v1 = vadd.f32 %v1836_v63, %v1662_v62 }
 0x45d   : > { %2945 = vtanh.f32 %v1837_v1 }
 0x467   : > { %v2946_v5 = vpop.eup %2945 }
 0x468   : > { %v1840_v7 = vmul.f32 %v2946_v5, %v1839_v4 }
 0x46a   : > { %v1842_v8 = vadd.f32 %v1841_v6, %v1840_v7 }
 0x46c   : > { %v1843_v2 = vadd.f32 %v1842_v8, %v3756_v15 }
 0x46e   : > { %1846 = vst [vmem:[%s529_s27] sm:$0xff] %v1843_v2 }
 0x46f   : > { %3192 = shalt.err (!%p3189_p11)
}
 0x470   : > { %s3193_s29 = scalar_lea.hbm %s3856_s10, 128  ;;  %s3197_s28 = scalar_lea.hbm %s3977_s24, 256 }
 0x471   : > { %p3194_p8 = scmp.ne.s32.totalorder %s3856_s10, %s3193_s29  ;;  %p3198_p13 = scmp.lt.u32.totalorder %s3856_s10, %s3977_s24 }
 0x472   : > { %p3199_p3 = scmp.lt.u32.totalorder %s3197_s28, %s3193_s29  ;;  %p3201_p10 = scmp.lt.u32.totalorder %s3193_s29, %s3856_s10 }
 0x473   : > { %p3195_p2 = pnand %p3194_p8, %p3974_p7 }
 0x474   : > { %p3200_p6 = por %p3199_p3, %p3198_p13 }
 0x475   : > { %p3196_p5 = pneg %p3195_p2 }
 0x476   : > { %p3202_p1 = por %p3201_p10, %p3200_p6 }
 0x478   : > { %p3203_p0 = pnand %p3202_p1, %p3196_p5 }
 0x47a   : > { %3206 = shalt.err (!%p3203_p0)
}
 0x47b   : > { %2838 = dma.vmem_to_hbm [thread:$0]  (%p3974_p7), %s1898_s12, 128, %s3856_s10, %s1853_s18  }
 0x47c PF: > { %s3978_s13 = sld [smem:[#allocation24_spill]]  ;;  %s3979_s9 = sld [smem:[#allocation25_spill]] }
 0x47d   : > { %p3981_p4 = scmp.ge.s32.totalorder %s3265_s16, 2 }
 0x482   : > { %s1909_s27 = sand.u32 1, %s3978_s13   ;;  %p3980_p12 = scmp.ne.s32.totalorder %s3979_s9, 0 }
 0x483   : > { %s1910_s17 = scalar_lea.sflag [#allocation4], %s1909_s27 }
 0x484   : > { %p2863_p9 = pnand %p3981_p4, %p3980_p12 }
 0x486   : > { %3244 = dma.done.wait (!%p2863_p9), %s1910_s17, 128  }
 0x487   : > { %3246 = vsyncadd (!%p2863_p9), %s1910_s17, 4294967168  ;;  %s3982_s26 = sadd.s32 4294967294, %s3265_s16  }
 0x488   : > { %s1918_s20 = sand.u32 1, %s3982_s26  }
 0x489   : > { %s1919_s22 = scalar_lea.sflag [#allocation15], %s1918_s20 }
 0x48a   : > { %3248 = dma.done.wait (!%p2863_p9), %s1919_s22, 256  }
 0x48b   : > { %3250 = vsyncadd (!%p2863_p9), %s1919_s22, 4294967040  ;;  %s3983_s16 = sld [smem:[#allocation26_spill]]  ;;  %s3984_s21 = sld [smem:[#allocation27_spill]] }
 0x48c   : > { %s3985_s13 = smov %s3257_s14  ;;  %s3986_s14 = smov %s3261_s15 }
 0x491   : > { %p34_p7 = scmp.ge.s32.totalorder %s3983_s16, 4   ;;  %s3987_s15 = smov %s3984_s21 }
 0x493   :  { %36 = sbr.rel (!%p34_p7) target bundleno = 19 (0x13), region = 182 }
 0x49a   :  { %1933 = vsyncpa [#allocation3], 1 }
 0x49b   :  { %1935 = vsyncpa [#allocation3 + $0x1], 1 }
 0x49c   :  { %1936 = vsyncpa [#allocation6], 1 }
 0x49d   :  { %1938 = vsyncpa [#allocation6 + $0x1], 1 }
 0x49e   :  { %1939 = vsyncpa [#allocation9], 1 }
 0x49f   :  { %1941 = vsyncpa [#allocation9 + $0x1], 1 }
 0x4a0   :  { %1942 = vsyncpa [#allocation12], 1 }
 0x4a1   :  { %1943 = vsyncpa [#allocation4], 1 }
 0x4a2   :  { %1945 = vsyncpa [#allocation4 + $0x1], 1 }
 0x4a3   :  { %1946 = vsyncpa [#allocation15], 1 }
 0x4a4   :  { %1948 = vsyncpa [#allocation15 + $0x1], 1 }

</bundles_post_ra>
